<compile_context>
chip_gen: v5e
topology: v5e:2x2
jax: 0.10.0
libtpu: 0.0.40
codegen_flags: <defaults>
</compile_context>

<pallas_src>
import functools
import math

import jax
import jax.numpy as jnp
from jax.experimental import pallas as pl
from jax.experimental.pallas import tpu as pltpu


# ------------------------------- helpers ------------------------------------

def _pick_tile(dim, prefs):
    """Largest preferred tile that divides `dim`, else the full dim (always legal)."""
    for p in prefs:
        if dim % p == 0:
            return p
    return dim


def _round_up(x, m):
    return (x + m - 1) // m * m


# --------------------- fused LayerNorm + matmul (+bias/act) ------------------

def _ln_matmul_kernel(x_ref, g_ref, bln_ref, w_ref, *rest, has_bias, activation):
    if has_bias:
        b_ref, o_ref = rest
    else:
        (o_ref,) = rest
    x = x_ref[...].astype(jnp.float32)
    mean = jnp.mean(x, axis=-1, keepdims=True)
    xc = x - mean
    var = jnp.mean(xc * xc, axis=-1, keepdims=True)
    y = xc * jax.lax.rsqrt(var + 1e-5)
    y = y * g_ref[...].astype(jnp.float32) + bln_ref[...].astype(jnp.float32)
    acc = jnp.dot(y.astype(w_ref.dtype), w_ref[...],
                  preferred_element_type=jnp.float32)
    if has_bias:
        acc = acc + b_ref[...].astype(jnp.float32)
    if activation == "quick_gelu":          # CLIP QuickGELU: x * sigmoid(1.702 x)
        acc = acc * jax.nn.sigmoid(1.702 * acc)
    o_ref[...] = acc.astype(o_ref.dtype)


def ln_matmul(x, ln_g, ln_b, w, b=None, activation=None):
    """out = act(LayerNorm(x) @ w + b).  x:[M,K] (K = model width, kept whole so
    the LN prologue sees the full row)."""
    M, K = x.shape
    K2, N = w.shape
    assert K == K2
    tm = _pick_tile(M, (256, 128, 64, 32, 16, 8))
    tn = _pick_tile(N, (256, 128))
    grid = (M // tm, N // tn)
    in_specs = [
        pl.BlockSpec((tm, K), lambda i, j: (i, 0)),
        pl.BlockSpec((1, K), lambda i, j: (0, 0)),
        pl.BlockSpec((1, K), lambda i, j: (0, 0)),
        pl.BlockSpec((K, tn), lambda i, j: (0, j)),
    ]
    args = [x, ln_g.reshape(1, K), ln_b.reshape(1, K), w]
    if b is not None:
        in_specs.append(pl.BlockSpec((1, tn), lambda i, j: (0, j)))
        args.append(b.reshape(1, N))
    return pl.pallas_call(
        functools.partial(_ln_matmul_kernel, has_bias=b is not None,
                          activation=activation),
        grid=grid,
        in_specs=in_specs,
        out_specs=pl.BlockSpec((tm, tn), lambda i, j: (i, j)),
        out_shape=jax.ShapeDtypeStruct((M, N), x.dtype),
        compiler_params=pltpu.CompilerParams(
            dimension_semantics=("parallel", "parallel")),
    )(*args)


# --------------- K-tiled matmul (+bias/act/residual) with f32 acc ------------

def _matmul_kernel(x_ref, w_ref, *rest, has_bias, has_residual, activation):
    idx = 0
    b_ref = rest[idx] if has_bias else None
    idx += int(has_bias)
    r_ref = rest[idx] if has_residual else None
    idx += int(has_residual)
    o_ref = rest[idx]
    acc_ref = rest[idx + 1]

    k = pl.program_id(2)

    @pl.when(k == 0)
    def _():
        acc_ref[...] = jnp.zeros_like(acc_ref)

    acc_ref[...] += jnp.dot(x_ref[...], w_ref[...],
                            preferred_element_type=jnp.float32)

    @pl.when(k == pl.num_programs(2) - 1)
    def _():
        acc = acc_ref[...]
        if has_bias:
            acc = acc + b_ref[...].astype(jnp.float32)
        if activation == "quick_gelu":
            acc = acc * jax.nn.sigmoid(1.702 * acc)
        if has_residual:
            acc = acc + r_ref[...].astype(jnp.float32)
        o_ref[...] = acc.astype(o_ref.dtype)


def matmul_fused(x, w, b=None, residual=None, activation=None, out_dtype=None):
    """out = act(x @ w + b) + residual.  Tiled over (M, N, K) with an f32 VMEM
    accumulator; bias/activation/residual fused into the K-final epilogue."""
    M, K = x.shape
    K2, N = w.shape
    assert K == K2
    out_dtype = out_dtype or x.dtype
    tm = _pick_tile(M, (256, 128, 64, 32, 16, 8))
    tn = _pick_tile(N, (256, 128))
    tk = _pick_tile(K, (512, 256, 128))
    grid = (M // tm, N // tn, K // tk)
    in_specs = [
        pl.BlockSpec((tm, tk), lambda i, j, k: (i, k)),
        pl.BlockSpec((tk, tn), lambda i, j, k: (k, j)),
    ]
    args = [x, w]
    if b is not None:
        in_specs.append(pl.BlockSpec((1, tn), lambda i, j, k: (0, j)))
        args.append(b.reshape(1, N))
    if residual is not None:
        in_specs.append(pl.BlockSpec((tm, tn), lambda i, j, k: (i, j)))
        args.append(residual)
    return pl.pallas_call(
        functools.partial(_matmul_kernel, has_bias=b is not None,
                          has_residual=residual is not None,
                          activation=activation),
        grid=grid,
        in_specs=in_specs,
        out_specs=pl.BlockSpec((tm, tn), lambda i, j, k: (i, j)),
        out_shape=jax.ShapeDtypeStruct((M, N), out_dtype),
        scratch_shapes=[pltpu.VMEM((tm, tn), jnp.float32)],
        compiler_params=pltpu.CompilerParams(
            dimension_semantics=("parallel", "parallel", "arbitrary")),
    )(*args)


# ------------------------------ LayerNorm (ln_pre) ---------------------------

def _layernorm_kernel(x_ref, g_ref, b_ref, o_ref):
    x = x_ref[...].astype(jnp.float32)
    mean = jnp.mean(x, axis=-1, keepdims=True)
    xc = x - mean
    var = jnp.mean(xc * xc, axis=-1, keepdims=True)
    y = xc * jax.lax.rsqrt(var + 1e-5)
    o_ref[...] = (y * g_ref[...].astype(jnp.float32)
                  + b_ref[...].astype(jnp.float32)).astype(o_ref.dtype)


def layernorm(x, g, b):
    M, D = x.shape
    tm = _pick_tile(M, (256, 128, 64, 32, 16, 8))
    return pl.pallas_call(
        _layernorm_kernel,
        grid=(M // tm,),
        in_specs=[pl.BlockSpec((tm, D), lambda i: (i, 0)),
                  pl.BlockSpec((1, D), lambda i: (0, 0)),
                  pl.BlockSpec((1, D), lambda i: (0, 0))],
        out_specs=pl.BlockSpec((tm, D), lambda i: (i, 0)),
        out_shape=jax.ShapeDtypeStruct((M, D), x.dtype),
        compiler_params=pltpu.CompilerParams(dimension_semantics=("parallel",)),
    )(x, g.reshape(1, D), b.reshape(1, D))


# ------------------------------ attention ------------------------------------

def _attn_kernel(qkv_ref, o_ref, *, heads, s_valid):
    # qkv_ref block: [1, S_pad, 3*width]   (q | k | v concatenated on the lane dim)
    S = qkv_ref.shape[1]
    width = qkv_ref.shape[2] // 3
    dh = width // heads
    scale = 1.0 / math.sqrt(dh)
    qkv = qkv_ref[0]                                         # [S, 3*width], bf16

    if s_valid < S:
        key_idx = jax.lax.broadcasted_iota(jnp.int32, (1, S), 1)
        neg = jnp.where(key_idx < s_valid, 0.0, -1e30).astype(jnp.float32)
    else:
        neg = None

    outs = []
    for h in range(heads):                                   # heads is small; unrolled
        qh = qkv[:, h * dh:(h + 1) * dh]
        kh = qkv[:, width + h * dh: width + (h + 1) * dh]
        vh = qkv[:, 2 * width + h * dh: 2 * width + (h + 1) * dh]
        # contract last dims directly (no k.T transpose through the XLU)
        s = jax.lax.dot_general(qh, kh, (((1,), (1,)), ((), ())),
                                preferred_element_type=jnp.float32) * scale
        if neg is not None:
            s = s + neg                                       # mask padded keys
        s = s - jnp.max(s, axis=-1, keepdims=True)
        p = jnp.exp(s)
        p = p * pl.reciprocal(jnp.sum(p, axis=-1, keepdims=True), approx=True)
        outs.append(jnp.dot(p.astype(vh.dtype), vh,
                            preferred_element_type=jnp.float32))
    o = jnp.concatenate(outs, axis=-1)                        # [S, width], lane-dense
    o_ref[0] = o.astype(o_ref.dtype)


def mha_attention(qkv, *, heads, s_valid):
    """qkv: [B, S_pad, 3*width] -> [B, S_pad, width]; one kernel call per batch."""
    B, S, W3 = qkv.shape
    width = W3 // 3
    return pl.pallas_call(
        functools.partial(_attn_kernel, heads=heads, s_valid=s_valid),
        grid=(B,),
        in_specs=[pl.BlockSpec((1, S, W3), lambda b: (b, 0, 0))],
        out_specs=pl.BlockSpec((1, S, width), lambda b: (b, 0, 0)),
        out_shape=jax.ShapeDtypeStruct((B, S, width), qkv.dtype),
        compiler_params=pltpu.CompilerParams(dimension_semantics=("parallel",)),
    )(qkv)


# -------------------- CLS-only tail: ln_post -> @proj -> l2norm --------------

def _cls_head_kernel(x_ref, g_ref, b_ref, w_ref, o_ref):
    x = x_ref[...].astype(jnp.float32)
    mean = jnp.mean(x, axis=-1, keepdims=True)
    xc = x - mean
    var = jnp.mean(xc * xc, axis=-1, keepdims=True)
    y = xc * jax.lax.rsqrt(var + 1e-5)
    y = y * g_ref[...].astype(jnp.float32) + b_ref[...].astype(jnp.float32)
    f = jnp.dot(y.astype(w_ref.dtype), w_ref[...],
                preferred_element_type=jnp.float32)
    n = jnp.sqrt(jnp.sum(f * f, axis=-1, keepdims=True))
    o_ref[...] = (f / n).astype(o_ref.dtype)                  # matches torch .norm()


def cls_head(x_cls, g, b, proj):
    B, D = x_cls.shape
    out_dim = proj.shape[1]
    return pl.pallas_call(
        _cls_head_kernel,
        out_shape=jax.ShapeDtypeStruct((B, out_dim), jnp.float32),
    )(x_cls, g.reshape(1, D), b.reshape(1, D), proj)


# ------------------------- parameter construction ----------------------------

def init_params(key, *, in_ch, patch, width, heads, layers, out_dim, num_patches):
    del heads  # head count only affects reshapes, not parameter shapes
    keys = jax.random.split(key, 6 + layers)
    scale = width ** -0.5
    wdt = jnp.bfloat16  # weights bf16; LN params / biases stay f32
    params = {
        "conv1_w": (jax.random.normal(keys[0], (width, in_ch, patch, patch),
                                      jnp.float32) * 0.02).astype(wdt),
        "class_embedding": jax.random.normal(keys[1], (width,), jnp.float32) * scale,
        "pos_embedding": jax.random.normal(keys[2], (num_patches + 1, width),
                                           jnp.float32) * scale,
        "ln_pre_g": jnp.ones((width,), jnp.float32),
        "ln_pre_b": jnp.zeros((width,), jnp.float32),
        "ln_post_g": jnp.ones((width,), jnp.float32),
        "ln_post_b": jnp.zeros((width,), jnp.float32),
        "proj": (jax.random.normal(keys[3], (width, out_dim), jnp.float32)
                 * scale).astype(wdt),
    }
    blocks = []
    for l in range(layers):
        k = jax.random.split(keys[6 + l], 4)
        blocks.append({
            "ln1_g": jnp.ones((width,), jnp.float32),
            "ln1_b": jnp.zeros((width,), jnp.float32),
            "ln2_g": jnp.ones((width,), jnp.float32),
            "ln2_b": jnp.zeros((width,), jnp.float32),
            "w_qkv": (jax.random.normal(k[0], (width, 3 * width), jnp.float32)
                      * scale).astype(wdt),
            "b_qkv": jnp.zeros((3 * width,), jnp.float32),
            "w_out": (jax.random.normal(k[1], (width, width), jnp.float32)
                      * scale).astype(wdt),
            "b_out": jnp.zeros((width,), jnp.float32),
            "w_fc": (jax.random.normal(k[2], (width, 4 * width), jnp.float32)
                     * scale).astype(wdt),
            "b_fc": jnp.zeros((4 * width,), jnp.float32),
            "w_proj": (jax.random.normal(k[3], (4 * width, width), jnp.float32)
                       * scale).astype(wdt),
            "b_proj": jnp.zeros((width,), jnp.float32),
        })
    params["blocks"] = blocks
    return params


# ------------------------------ forward path ---------------------------------

def dmn_get_image_features(image, params, *, patch, heads):
    """DMNClipWrapper.get_image_features(image).

    Returns (image_features_global, image_features_local); the PyTorch source
    assigns self.image_features_local = None before returning, so local is None.
    """
    B, C, H, W = image.shape
    width = params["conv1_w"].shape[0]
    gh, gw = H // patch, W // patch
    P = gh * gw
    S = P + 1
    S_pad = _round_up(S, 8)

    # conv1 (kernel == stride == patch, no bias)  ==  matmul over flattened patches.
    x = image.reshape(B, C, gh, patch, gw, patch)
    x = x.transpose(0, 2, 4, 1, 3, 5).reshape(B * P, C * patch * patch)
    w_conv = params["conv1_w"].reshape(width, C * patch * patch).T
    x = matmul_fused(x.astype(jnp.bfloat16), w_conv)            # [B*P, width], no bias
    x = x.reshape(B, P, width)

    # cat([class_embedding, patches]) + positional_embedding, padded to S_pad rows.
    cls = jnp.broadcast_to(params["class_embedding"].reshape(1, 1, width),
                           (B, 1, width))
    tok = jnp.concatenate([cls, x.astype(jnp.float32)], axis=1)  # [B, S, width]
    tok = tok + params["pos_embedding"][None]
    if S_pad > S:
        tok = jnp.pad(tok, ((0, 0), (0, S_pad - S), (0, 0)))
    xf = tok.astype(jnp.bfloat16).reshape(B * S_pad, width)

    # ln_pre (the .permute(1,0,2) pair in torch is seq-first plumbing; no-op here)
    xf = layernorm(xf, params["ln_pre_g"], params["ln_pre_b"])

    # transformer residual blocks — 4 fused matmul calls + 1 attention call each.
    for blk in params["blocks"]:
        qkv = ln_matmul(xf, blk["ln1_g"], blk["ln1_b"], blk["w_qkv"], blk["b_qkv"])
        a = mha_attention(qkv.reshape(B, S_pad, 3 * width), heads=heads, s_valid=S)
        xf = matmul_fused(a.reshape(B * S_pad, width), blk["w_out"], blk["b_out"],
                          residual=xf)
        h = ln_matmul(xf, blk["ln2_g"], blk["ln2_b"], blk["w_fc"], blk["b_fc"],
                      activation="quick_gelu")
        xf = matmul_fused(h, blk["w_proj"], blk["b_proj"], residual=xf)

    # Tail on the CLS token only (local features are always None in the source,
    # so projecting the other tokens is dead work).
    x_cls = xf.reshape(B, S_pad, width)[:, 0, :]                 # [B, width]
    image_features_global = cls_head(x_cls, params["ln_post_g"],
                                     params["ln_post_b"], params["proj"])
    image_features_local = None  # matches PyTorch: self.image_features_local = None
    return image_features_global, image_features_local


# ----------------------------------- main ------------------------------------

if __name__ == "__main__":
    # small ViT config: 32x32 image, 8x8 patches -> 16 patches + 1 cls = 17 tokens
    B, C, H, W = 2, 3, 32, 32
    PATCH, WIDTH, HEADS, LAYERS, OUT_DIM = 8, 64, 4, 2, 32

    key = jax.random.PRNGKey(0)
    k_img, k_par = jax.random.split(key)
    image = jax.random.normal(k_img, (B, C, H, W), jnp.float32)   # NCHW like torch
    params = init_params(
        k_par, in_ch=C, patch=PATCH, width=WIDTH, heads=HEADS,
        layers=LAYERS, out_dim=OUT_DIM,
        num_patches=(H // PATCH) * (W // PATCH))

    fwd = jax.jit(functools.partial(dmn_get_image_features, patch=PATCH, heads=HEADS))
    feats_global, feats_local = fwd(image, params)
    jax.block_until_ready(feats_global)

    assert feats_global.shape == (B, OUT_DIM)
    assert feats_local is None
    assert bool(jnp.all(jnp.isfinite(feats_global)))
    print("KERNEL_OK")
</pallas_src>

<mosaic_0001>
module attributes {stable_mosaic.version = 11 : i64} {
  func.func @_matmul_kernel(%arg0: i32, %arg1: i32, %arg2: i32, %arg3: memref<32x192xbf16, #tpu.memory_space<vmem>>, %arg4: memref<192x64xbf16, #tpu.memory_space<vmem>>, %arg5: memref<32x64xbf16, #tpu.memory_space<vmem>>, %arg6: memref<32x64xf32, #tpu.memory_space<vmem>>) attributes {dimension_semantics = [#tpu.dimension_semantics<parallel>, #tpu.dimension_semantics<parallel>, #tpu.dimension_semantics<arbitrary>], iteration_bounds = array<i64: 1, 1, 1>, scalar_prefetch = 0 : i64, scratch_operands = 1 : i64, tpu.core_type = #tpu.core_type<tc>, window_params = [{transform_indices = @transform_0, window_bounds = array<i64: 32, 192>}, {transform_indices = @transform_1, window_bounds = array<i64: 192, 64>}, {transform_indices = @transform_2, window_bounds = array<i64: 32, 64>}]} {
    %c0_i32 = arith.constant 0 : i32
    %0 = arith.cmpi eq, %arg2, %c0_i32 : i32
    %1 = arith.extui %0 : i1 to i32
    %c0_i32_0 = arith.constant 0 : i32
    %2 = arith.cmpi ne, %1, %c0_i32_0 : i32
    scf.if %2 {
      %cst_10 = arith.constant 0.000000e+00 : f32
      %12 = vector.broadcast %cst_10 : f32 to vector<32x64xf32>
      %c0_11 = arith.constant 0 : index
      %c0_12 = arith.constant 0 : index
      %13 = vector.load %arg6[%c0_11, %c0_12] : memref<32x64xf32, #tpu.memory_space<vmem>>, vector<32x64xf32>
      tpu.vector_store %arg6[%c0_11, %c0_12], %12 {strides = array<i32>} : memref<32x64xf32, #tpu.memory_space<vmem>>, vector<32x64xf32>,
    } else {
    }
    %c0 = arith.constant 0 : index
    %c0_1 = arith.constant 0 : index
    %3 = vector.load %arg6[%c0, %c0_1] : memref<32x64xf32, #tpu.memory_space<vmem>>, vector<32x64xf32>
    %c0_2 = arith.constant 0 : index
    %c0_3 = arith.constant 0 : index
    %4 = vector.load %arg3[%c0_2, %c0_3] : memref<32x192xbf16, #tpu.memory_space<vmem>>, vector<32x192xbf16>
    %c0_4 = arith.constant 0 : index
    %c0_5 = arith.constant 0 : index
    %5 = vector.load %arg4[%c0_4, %c0_5] : memref<192x64xbf16, #tpu.memory_space<vmem>>, vector<192x64xbf16>
    %cst = arith.constant dense<0.000000e+00> : vector<32x64xf32>
    %6 = tpu.matmul %4, %5, %cst {dimension_numbers = #tpu.dot_dimension_numbers<[1], [0], [0], [1], [0, 0, 1, 1], [], []>} : vector<32x192xbf16>, vector<192x64xbf16>, vector<32x64xf32> -> vector<32x64xf32>
    %7 = arith.addf %3, %6 : vector<32x64xf32>
    %c0_6 = arith.constant 0 : index
    %c0_7 = arith.constant 0 : index
    %8 = vector.load %arg6[%c0_6, %c0_7] : memref<32x64xf32, #tpu.memory_space<vmem>>, vector<32x64xf32>
    tpu.vector_store %arg6[%c0_6, %c0_7], %7 {strides = array<i32>} : memref<32x64xf32, #tpu.memory_space<vmem>>, vector<32x64xf32>,
    %c0_i32_8 = arith.constant 0 : i32
    %9 = arith.cmpi eq, %arg2, %c0_i32_8 : i32
    %10 = arith.extui %9 : i1 to i32
    %c0_i32_9 = arith.constant 0 : i32
    %11 = arith.cmpi ne, %10, %c0_i32_9 : i32
    scf.if %11 {
      %c0_10 = arith.constant 0 : index
      %c0_11 = arith.constant 0 : index
      %12 = vector.load %arg6[%c0_10, %c0_11] : memref<32x64xf32, #tpu.memory_space<vmem>>, vector<32x64xf32>
      %13 = arith.truncf %12 : vector<32x64xf32> to vector<32x64xbf16>
      %c0_12 = arith.constant 0 : index
      %c0_13 = arith.constant 0 : index
      %14 = vector.load %arg5[%c0_12, %c0_13] : memref<32x64xbf16, #tpu.memory_space<vmem>>, vector<32x64xbf16>
      tpu.vector_store %arg5[%c0_12, %c0_13], %13 {strides = array<i32>} : memref<32x64xbf16, #tpu.memory_space<vmem>>, vector<32x64xbf16>,
    } else {
    }
    return
  }
  func.func @transform_0(%arg0: i32, %arg1: i32, %arg2: i32) -> (i32, i32) {
    %c0_i32 = arith.constant 0 : i32
    return %arg0, %arg2 : i32, i32
  }
  func.func @transform_1(%arg0: i32, %arg1: i32, %arg2: i32) -> (i32, i32) {
    %c0_i32 = arith.constant 0 : i32
    return %arg2, %arg1 : i32, i32
  }
  func.func @transform_2(%arg0: i32, %arg1: i32, %arg2: i32) -> (i32, i32) {
    %c0_i32 = arith.constant 0 : i32
    return %arg0, %arg1 : i32, i32
  }
}

module attributes {stable_mosaic.version = 11 : i64} {
  func.func @_layernorm_kernel(%arg0: i32, %arg1: memref<16x64xbf16, #tpu.memory_space<vmem>>, %arg2: memref<1x64xf32, #tpu.memory_space<vmem>>, %arg3: memref<1x64xf32, #tpu.memory_space<vmem>>, %arg4: memref<16x64xbf16, #tpu.memory_space<vmem>>) attributes {dimension_semantics = [#tpu.dimension_semantics<parallel>], iteration_bounds = array<i64: 3>, scalar_prefetch = 0 : i64, scratch_operands = 0 : i64, tpu.core_type = #tpu.core_type<tc>, window_params = [{transform_indices = @transform_0, window_bounds = array<i64: 16, 64>}, {pipeline_mode = #tpu.pipeline_mode<synchronous>, transform_indices = @transform_1, window_bounds = array<i64: 1, 64>}, {pipeline_mode = #tpu.pipeline_mode<synchronous>, transform_indices = @transform_2, window_bounds = array<i64: 1, 64>}, {transform_indices = @transform_3, window_bounds = array<i64: 16, 64>}]} {
    %c0 = arith.constant 0 : index
    %c0_0 = arith.constant 0 : index
    %0 = vector.load %arg1[%c0, %c0_0] : memref<16x64xbf16, #tpu.memory_space<vmem>>, vector<16x64xbf16>
    %1 = arith.extf %0 : vector<16x64xbf16> to vector<16x64xf32>
    %cst = arith.constant dense<0.000000e+00> : vector<16xf32>
    %2 = vector.multi_reduction <add>, %1, %cst [1] : vector<16x64xf32> to vector<16xf32>
    %3 = vector.shape_cast %2 : vector<16xf32> to vector<16x1xf32>
    %cst_1 = arith.constant 6.400000e+01 : f32
    %4 = vector.broadcast %cst_1 : f32 to vector<16x1xf32>
    %5 = arith.divf %3, %4 : vector<16x1xf32>
    %6 = vector.broadcast %5 : vector<16x1xf32> to vector<16x64xf32>
    %7 = arith.subf %1, %6 : vector<16x64xf32>
    %8 = arith.mulf %7, %7 : vector<16x64xf32>
    %cst_2 = arith.constant dense<0.000000e+00> : vector<16xf32>
    %9 = vector.multi_reduction <add>, %8, %cst_2 [1] : vector<16x64xf32> to vector<16xf32>
    %10 = vector.shape_cast %9 : vector<16xf32> to vector<16x1xf32>
    %cst_3 = arith.constant 6.400000e+01 : f32
    %11 = vector.broadcast %cst_3 : f32 to vector<16x1xf32>
    %12 = arith.divf %10, %11 : vector<16x1xf32>
    %cst_4 = arith.constant 9.99999974E-6 : f32
    %13 = vector.broadcast %cst_4 : f32 to vector<16x1xf32>
    %14 = arith.addf %12, %13 : vector<16x1xf32>
    %15 = math.rsqrt %14 : vector<16x1xf32>
    %16 = vector.broadcast %15 : vector<16x1xf32> to vector<16x64xf32>
    %17 = arith.mulf %7, %16 : vector<16x64xf32>
    %c0_5 = arith.constant 0 : index
    %c0_6 = arith.constant 0 : index
    %18 = vector.load %arg2[%c0_5, %c0_6] : memref<1x64xf32, #tpu.memory_space<vmem>>, vector<1x64xf32>
    %19 = vector.broadcast %18 : vector<1x64xf32> to vector<16x64xf32>
    %20 = arith.mulf %17, %19 : vector<16x64xf32>
    %c0_7 = arith.constant 0 : index
    %c0_8 = arith.constant 0 : index
    %21 = vector.load %arg3[%c0_7, %c0_8] : memref<1x64xf32, #tpu.memory_space<vmem>>, vector<1x64xf32>
    %22 = vector.broadcast %21 : vector<1x64xf32> to vector<16x64xf32>
    %23 = arith.addf %20, %22 : vector<16x64xf32>
    %24 = arith.truncf %23 : vector<16x64xf32> to vector<16x64xbf16>
    %c0_9 = arith.constant 0 : index
    %c0_10 = arith.constant 0 : index
    %25 = vector.load %arg4[%c0_9, %c0_10] : memref<16x64xbf16, #tpu.memory_space<vmem>>, vector<16x64xbf16>
    tpu.vector_store %arg4[%c0_9, %c0_10], %24 {strides = array<i32>} : memref<16x64xbf16, #tpu.memory_space<vmem>>, vector<16x64xbf16>,
    return
  }
  func.func @transform_0(%arg0: i32) -> (i32, i32) {
    %c0_i32 = arith.constant 0 : i32
    %c0_i32_0 = arith.constant 0 : i32
    return %arg0, %c0_i32 : i32, i32
  }
  func.func @transform_1(%arg0: i32) -> (i32, i32) {
    %c0_i32 = arith.constant 0 : i32
    %c0_i32_0 = arith.constant 0 : i32
    %c0_i32_1 = arith.constant 0 : i32
    return %c0_i32, %c0_i32_0 : i32, i32
  }
  func.func @transform_2(%arg0: i32) -> (i32, i32) {
    %c0_i32 = arith.constant 0 : i32
    %c0_i32_0 = arith.constant 0 : i32
    %c0_i32_1 = arith.constant 0 : i32
    return %c0_i32, %c0_i32_0 : i32, i32
  }
  func.func @transform_3(%arg0: i32) -> (i32, i32) {
    %c0_i32 = arith.constant 0 : i32
    %c0_i32_0 = arith.constant 0 : i32
    return %arg0, %c0_i32 : i32, i32
  }
}

module attributes {stable_mosaic.version = 11 : i64} {
  func.func @_attn_kernel(%arg0: i32, %arg1: memref<1x24x192xbf16, #tpu.memory_space<vmem>>, %arg2: memref<1x24x64xbf16, #tpu.memory_space<vmem>>) attributes {dimension_semantics = [#tpu.dimension_semantics<parallel>], iteration_bounds = array<i64: 2>, scalar_prefetch = 0 : i64, scratch_operands = 0 : i64, tpu.core_type = #tpu.core_type<tc>, window_params = [{transform_indices = @transform_0, window_bounds = array<i64: 1, 24, 192>}, {transform_indices = @transform_1, window_bounds = array<i64: 1, 24, 64>}]} {
    %c0 = arith.constant 0 : index
    %c0_0 = arith.constant 0 : index
    %c0_1 = arith.constant 0 : index
    %0 = vector.load %arg1[%c0, %c0_0, %c0_1] : memref<1x24x192xbf16, #tpu.memory_space<vmem>>, vector<1x24x192xbf16>
    %1 = vector.shape_cast %0 : vector<1x24x192xbf16> to vector<24x192xbf16>
    %2 = tpu.iota {dimensions = array<i32: 1>} : vector<1x24xi32>
    %c17_i32 = arith.constant 17 : i32
    %3 = vector.broadcast %c17_i32 : i32 to vector<1x24xi32>
    %4 = arith.cmpi slt, %2, %3 : vector<1x24xi32>
    %cst = arith.constant 0.000000e+00 : f32
    %cst_2 = arith.constant -1.000000e+30 : f32
    %5 = vector.broadcast %cst : f32 to vector<1x24xf32>
    %6 = vector.broadcast %cst_2 : f32 to vector<1x24xf32>
    %7 = arith.select %4, %5, %6 : vector<1x24xi1>, vector<1x24xf32>
    %8 = vector.extract_strided_slice %1 {offsets = [0, 0], sizes = [24, 16], strides = [1, 1]} : vector<24x192xbf16> to vector<24x16xbf16>
    %9 = vector.extract_strided_slice %1 {offsets = [0, 64], sizes = [24, 16], strides = [1, 1]} : vector<24x192xbf16> to vector<24x16xbf16>
    %10 = vector.extract_strided_slice %1 {offsets = [0, 128], sizes = [24, 16], strides = [1, 1]} : vector<24x192xbf16> to vector<24x16xbf16>
    %cst_3 = arith.constant dense<0.000000e+00> : vector<24x24xf32>
    %11 = tpu.matmul %8, %9, %cst_3 {dimension_numbers = #tpu.dot_dimension_numbers<[1], [1], [0], [0], [0, 0, 1, 0], [], []>} : vector<24x16xbf16>, vector<24x16xbf16>, vector<24x24xf32> -> vector<24x24xf32>
    %cst_4 = arith.constant 2.500000e-01 : f32
    %12 = vector.broadcast %cst_4 : f32 to vector<24x24xf32>
    %13 = arith.mulf %11, %12 : vector<24x24xf32>
    %14 = vector.broadcast %7 : vector<1x24xf32> to vector<24x24xf32>
    %15 = arith.addf %13, %14 : vector<24x24xf32>
    %cst_5 = arith.constant dense<0xFF800000> : vector<24xf32>
    %16 = vector.multi_reduction <maximumf>, %15, %cst_5 [1] : vector<24x24xf32> to vector<24xf32>
    %17 = vector.shape_cast %16 : vector<24xf32> to vector<24x1xf32>
    %18 = vector.broadcast %17 : vector<24x1xf32> to vector<24x24xf32>
    %19 = arith.subf %15, %18 : vector<24x24xf32>
    %20 = math.exp %19 : vector<24x24xf32>
    %cst_6 = arith.constant dense<0.000000e+00> : vector<24xf32>
    %21 = vector.multi_reduction <add>, %20, %cst_6 [1] : vector<24x24xf32> to vector<24xf32>
    %22 = vector.shape_cast %21 : vector<24xf32> to vector<24x1xf32>
    %23 = tpu.reciprocal %22 {approx = true} : vector<24x1xf32> -> vector<24x1xf32>
    %24 = vector.broadcast %23 : vector<24x1xf32> to vector<24x24xf32>
    %25 = arith.mulf %20, %24 : vector<24x24xf32>
    %26 = arith.truncf %25 : vector<24x24xf32> to vector<24x24xbf16>
    %cst_7 = arith.constant dense<0.000000e+00> : vector<24x16xf32>
    %27 = tpu.matmul %26, %10, %cst_7 {dimension_numbers = #tpu.dot_dimension_numbers<[1], [0], [0], [1], [0, 0, 1, 1], [], []>} : vector<24x24xbf16>, vector<24x16xbf16>, vector<24x16xf32> -> vector<24x16xf32>
    %28 = vector.extract_strided_slice %1 {offsets = [0, 16], sizes = [24, 16], strides = [1, 1]} : vector<24x192xbf16> to vector<24x16xbf16>
    %29 = vector.extract_strided_slice %1 {offsets = [0, 80], sizes = [24, 16], strides = [1, 1]} : vector<24x192xbf16> to vector<24x16xbf16>
    %30 = vector.extract_strided_slice %1 {offsets = [0, 144], sizes = [24, 16], strides = [1, 1]} : vector<24x192xbf16> to vector<24x16xbf16>
    %cst_8 = arith.constant dense<0.000000e+00> : vector<24x24xf32>
    %31 = tpu.matmul %28, %29, %cst_8 {dimension_numbers = #tpu.dot_dimension_numbers<[1], [1], [0], [0], [0, 0, 1, 0], [], []>} : vector<24x16xbf16>, vector<24x16xbf16>, vector<24x24xf32> -> vector<24x24xf32>
    %cst_9 = arith.constant 2.500000e-01 : f32
    %32 = vector.broadcast %cst_9 : f32 to vector<24x24xf32>
    %33 = arith.mulf %31, %32 : vector<24x24xf32>
    %34 = vector.broadcast %7 : vector<1x24xf32> to vector<24x24xf32>
    %35 = arith.addf %33, %34 : vector<24x24xf32>
    %cst_10 = arith.constant dense<0xFF800000> : vector<24xf32>
    %36 = vector.multi_reduction <maximumf>, %35, %cst_10 [1] : vector<24x24xf32> to vector<24xf32>
    %37 = vector.shape_cast %36 : vector<24xf32> to vector<24x1xf32>
    %38 = vector.broadcast %37 : vector<24x1xf32> to vector<24x24xf32>
    %39 = arith.subf %35, %38 : vector<24x24xf32>
    %40 = math.exp %39 : vector<24x24xf32>
    %cst_11 = arith.constant dense<0.000000e+00> : vector<24xf32>
    %41 = vector.multi_reduction <add>, %40, %cst_11 [1] : vector<24x24xf32> to vector<24xf32>
    %42 = vector.shape_cast %41 : vector<24xf32> to vector<24x1xf32>
    %43 = tpu.reciprocal %42 {approx = true} : vector<24x1xf32> -> vector<24x1xf32>
    %44 = vector.broadcast %43 : vector<24x1xf32> to vector<24x24xf32>
    %45 = arith.mulf %40, %44 : vector<24x24xf32>
    %46 = arith.truncf %45 : vector<24x24xf32> to vector<24x24xbf16>
    %cst_12 = arith.constant dense<0.000000e+00> : vector<24x16xf32>
    %47 = tpu.matmul %46, %30, %cst_12 {dimension_numbers = #tpu.dot_dimension_numbers<[1], [0], [0], [1], [0, 0, 1, 1], [], []>} : vector<24x24xbf16>, vector<24x16xbf16>, vector<24x16xf32> -> vector<24x16xf32>
    %48 = vector.extract_strided_slice %1 {offsets = [0, 32], sizes = [24, 16], strides = [1, 1]} : vector<24x192xbf16> to vector<24x16xbf16>
    %49 = vector.extract_strided_slice %1 {offsets = [0, 96], sizes = [24, 16], strides = [1, 1]} : vector<24x192xbf16> to vector<24x16xbf16>
    %50 = vector.extract_strided_slice %1 {offsets = [0, 160], sizes = [24, 16], strides = [1, 1]} : vector<24x192xbf16> to vector<24x16xbf16>
    %cst_13 = arith.constant dense<0.000000e+00> : vector<24x24xf32>
    %51 = tpu.matmul %48, %49, %cst_13 {dimension_numbers = #tpu.dot_dimension_numbers<[1], [1], [0], [0], [0, 0, 1, 0], [], []>} : vector<24x16xbf16>, vector<24x16xbf16>, vector<24x24xf32> -> vector<24x24xf32>
    %cst_14 = arith.constant 2.500000e-01 : f32
    %52 = vector.broadcast %cst_14 : f32 to vector<24x24xf32>
    %53 = arith.mulf %51, %52 : vector<24x24xf32>
    %54 = vector.broadcast %7 : vector<1x24xf32> to vector<24x24xf32>
    %55 = arith.addf %53, %54 : vector<24x24xf32>
    %cst_15 = arith.constant dense<0xFF800000> : vector<24xf32>
    %56 = vector.multi_reduction <maximumf>, %55, %cst_15 [1] : vector<24x24xf32> to vector<24xf32>
    %57 = vector.shape_cast %56 : vector<24xf32> to vector<24x1xf32>
    %58 = vector.broadcast %57 : vector<24x1xf32> to vector<24x24xf32>
    %59 = arith.subf %55, %58 : vector<24x24xf32>
    %60 = math.exp %59 : vector<24x24xf32>
    %cst_16 = arith.constant dense<0.000000e+00> : vector<24xf32>
    %61 = vector.multi_reduction <add>, %60, %cst_16 [1] : vector<24x24xf32> to vector<24xf32>
    %62 = vector.shape_cast %61 : vector<24xf32> to vector<24x1xf32>
    %63 = tpu.reciprocal %62 {approx = true} : vector<24x1xf32> -> vector<24x1xf32>
    %64 = vector.broadcast %63 : vector<24x1xf32> to vector<24x24xf32>
    %65 = arith.mulf %60, %64 : vector<24x24xf32>
    %66 = arith.truncf %65 : vector<24x24xf32> to vector<24x24xbf16>
    %cst_17 = arith.constant dense<0.000000e+00> : vector<24x16xf32>
    %67 = tpu.matmul %66, %50, %cst_17 {dimension_numbers = #tpu.dot_dimension_numbers<[1], [0], [0], [1], [0, 0, 1, 1], [], []>} : vector<24x24xbf16>, vector<24x16xbf16>, vector<24x16xf32> -> vector<24x16xf32>
    %68 = vector.extract_strided_slice %1 {offsets = [0, 48], sizes = [24, 16], strides = [1, 1]} : vector<24x192xbf16> to vector<24x16xbf16>
    %69 = vector.extract_strided_slice %1 {offsets = [0, 112], sizes = [24, 16], strides = [1, 1]} : vector<24x192xbf16> to vector<24x16xbf16>
    %70 = vector.extract_strided_slice %1 {offsets = [0, 176], sizes = [24, 16], strides = [1, 1]} : vector<24x192xbf16> to vector<24x16xbf16>
    %cst_18 = arith.constant dense<0.000000e+00> : vector<24x24xf32>
    %71 = tpu.matmul %68, %69, %cst_18 {dimension_numbers = #tpu.dot_dimension_numbers<[1], [1], [0], [0], [0, 0, 1, 0], [], []>} : vector<24x16xbf16>, vector<24x16xbf16>, vector<24x24xf32> -> vector<24x24xf32>
    %cst_19 = arith.constant 2.500000e-01 : f32
    %72 = vector.broadcast %cst_19 : f32 to vector<24x24xf32>
    %73 = arith.mulf %71, %72 : vector<24x24xf32>
    %74 = vector.broadcast %7 : vector<1x24xf32> to vector<24x24xf32>
    %75 = arith.addf %73, %74 : vector<24x24xf32>
    %cst_20 = arith.constant dense<0xFF800000> : vector<24xf32>
    %76 = vector.multi_reduction <maximumf>, %75, %cst_20 [1] : vector<24x24xf32> to vector<24xf32>
    %77 = vector.shape_cast %76 : vector<24xf32> to vector<24x1xf32>
    %78 = vector.broadcast %77 : vector<24x1xf32> to vector<24x24xf32>
    %79 = arith.subf %75, %78 : vector<24x24xf32>
    %80 = math.exp %79 : vector<24x24xf32>
    %cst_21 = arith.constant dense<0.000000e+00> : vector<24xf32>
    %81 = vector.multi_reduction <add>, %80, %cst_21 [1] : vector<24x24xf32> to vector<24xf32>
    %82 = vector.shape_cast %81 : vector<24xf32> to vector<24x1xf32>
    %83 = tpu.reciprocal %82 {approx = true} : vector<24x1xf32> -> vector<24x1xf32>
    %84 = vector.broadcast %83 : vector<24x1xf32> to vector<24x24xf32>
    %85 = arith.mulf %80, %84 : vector<24x24xf32>
    %86 = arith.truncf %85 : vector<24x24xf32> to vector<24x24xbf16>
    %cst_22 = arith.constant dense<0.000000e+00> : vector<24x16xf32>
    %87 = tpu.matmul %86, %70, %cst_22 {dimension_numbers = #tpu.dot_dimension_numbers<[1], [0], [0], [1], [0, 0, 1, 1], [], []>} : vector<24x24xbf16>, vector<24x16xbf16>, vector<24x16xf32> -> vector<24x16xf32>
    %88 = tpu.concatenate %27, %47, %67, %87 in 1 : vector<24x16xf32>, vector<24x16xf32>, vector<24x16xf32>, vector<24x16xf32> -> vector<24x64xf32>
    %89 = arith.truncf %88 : vector<24x64xf32> to vector<24x64xbf16>
    %c0_23 = arith.constant 0 : index
    %c0_24 = arith.constant 0 : index
    %c0_25 = arith.constant 0 : index
    %90 = vector.load %arg2[%c0_23, %c0_24, %c0_25] : memref<1x24x64xbf16, #tpu.memory_space<vmem>>, vector<1x24x64xbf16>
    %91 = vector.shape_cast %90 : vector<1x24x64xbf16> to vector<24x64xbf16>
    %92 = vector.shape_cast %89 : vector<24x64xbf16> to vector<1x24x64xbf16>
    tpu.vector_store %arg2[%c0_23, %c0_24, %c0_25], %92 {strides = array<i32>} : memref<1x24x64xbf16, #tpu.memory_space<vmem>>, vector<1x24x64xbf16>,
    return
  }
  func.func @transform_0(%arg0: i32) -> (i32, i32, i32) {
    %c0_i32 = arith.constant 0 : i32
    %c0_i32_0 = arith.constant 0 : i32
    %c0_i32_1 = arith.constant 0 : i32
    return %arg0, %c0_i32, %c0_i32_0 : i32, i32, i32
  }
  func.func @transform_1(%arg0: i32) -> (i32, i32, i32) {
    %c0_i32 = arith.constant 0 : i32
    %c0_i32_0 = arith.constant 0 : i32
    %c0_i32_1 = arith.constant 0 : i32
    return %arg0, %c0_i32, %c0_i32_0 : i32, i32, i32
  }
}

module attributes {stable_mosaic.version = 11 : i64} {
  func.func @_ln_matmul_kernel(%arg0: i32, %arg1: i32, %arg2: memref<16x64xbf16, #tpu.memory_space<vmem>>, %arg3: memref<1x64xf32, #tpu.memory_space<vmem>>, %arg4: memref<1x64xf32, #tpu.memory_space<vmem>>, %arg5: memref<64x192xbf16, #tpu.memory_space<vmem>>, %arg6: memref<1x192xf32, #tpu.memory_space<vmem>>, %arg7: memref<16x192xbf16, #tpu.memory_space<vmem>>) attributes {dimension_semantics = [#tpu.dimension_semantics<parallel>, #tpu.dimension_semantics<parallel>], iteration_bounds = array<i64: 3, 1>, scalar_prefetch = 0 : i64, scratch_operands = 0 : i64, tpu.core_type = #tpu.core_type<tc>, window_params = [{transform_indices = @transform_0, window_bounds = array<i64: 16, 64>}, {pipeline_mode = #tpu.pipeline_mode<synchronous>, transform_indices = @transform_1, window_bounds = array<i64: 1, 64>}, {pipeline_mode = #tpu.pipeline_mode<synchronous>, transform_indices = @transform_2, window_bounds = array<i64: 1, 64>}, {transform_indices = @transform_3, window_bounds = array<i64: 64, 192>}, {transform_indices = @transform_4, window_bounds = array<i64: 1, 192>}, {transform_indices = @transform_5, window_bounds = array<i64: 16, 192>}]} {
    %c0 = arith.constant 0 : index
    %c0_0 = arith.constant 0 : index
    %0 = vector.load %arg2[%c0, %c0_0] : memref<16x64xbf16, #tpu.memory_space<vmem>>, vector<16x64xbf16>
    %1 = arith.extf %0 : vector<16x64xbf16> to vector<16x64xf32>
    %cst = arith.constant dense<0.000000e+00> : vector<16xf32>
    %2 = vector.multi_reduction <add>, %1, %cst [1] : vector<16x64xf32> to vector<16xf32>
    %3 = vector.shape_cast %2 : vector<16xf32> to vector<16x1xf32>
    %cst_1 = arith.constant 6.400000e+01 : f32
    %4 = vector.broadcast %cst_1 : f32 to vector<16x1xf32>
    %5 = arith.divf %3, %4 : vector<16x1xf32>
    %6 = vector.broadcast %5 : vector<16x1xf32> to vector<16x64xf32>
    %7 = arith.subf %1, %6 : vector<16x64xf32>
    %8 = arith.mulf %7, %7 : vector<16x64xf32>
    %cst_2 = arith.constant dense<0.000000e+00> : vector<16xf32>
    %9 = vector.multi_reduction <add>, %8, %cst_2 [1] : vector<16x64xf32> to vector<16xf32>
    %10 = vector.shape_cast %9 : vector<16xf32> to vector<16x1xf32>
    %cst_3 = arith.constant 6.400000e+01 : f32
    %11 = vector.broadcast %cst_3 : f32 to vector<16x1xf32>
    %12 = arith.divf %10, %11 : vector<16x1xf32>
    %cst_4 = arith.constant 9.99999974E-6 : f32
    %13 = vector.broadcast %cst_4 : f32 to vector<16x1xf32>
    %14 = arith.addf %12, %13 : vector<16x1xf32>
    %15 = math.rsqrt %14 : vector<16x1xf32>
    %16 = vector.broadcast %15 : vector<16x1xf32> to vector<16x64xf32>
    %17 = arith.mulf %7, %16 : vector<16x64xf32>
    %c0_5 = arith.constant 0 : index
    %c0_6 = arith.constant 0 : index
    %18 = vector.load %arg3[%c0_5, %c0_6] : memref<1x64xf32, #tpu.memory_space<vmem>>, vector<1x64xf32>
    %19 = vector.broadcast %18 : vector<1x64xf32> to vector<16x64xf32>
    %20 = arith.mulf %17, %19 : vector<16x64xf32>
    %c0_7 = arith.constant 0 : index
    %c0_8 = arith.constant 0 : index
    %21 = vector.load %arg4[%c0_7, %c0_8] : memref<1x64xf32, #tpu.memory_space<vmem>>, vector<1x64xf32>
    %22 = vector.broadcast %21 : vector<1x64xf32> to vector<16x64xf32>
    %23 = arith.addf %20, %22 : vector<16x64xf32>
    %24 = arith.truncf %23 : vector<16x64xf32> to vector<16x64xbf16>
    %c0_9 = arith.constant 0 : index
    %c0_10 = arith.constant 0 : index
    %25 = vector.load %arg5[%c0_9, %c0_10] : memref<64x192xbf16, #tpu.memory_space<vmem>>, vector<64x192xbf16>
    %cst_11 = arith.constant dense<0.000000e+00> : vector<16x192xf32>
    %26 = tpu.matmul %24, %25, %cst_11 {dimension_numbers = #tpu.dot_dimension_numbers<[1], [0], [0], [1], [0, 0, 1, 1], [], []>} : vector<16x64xbf16>, vector<64x192xbf16>, vector<16x192xf32> -> vector<16x192xf32>
    %c0_12 = arith.constant 0 : index
    %c0_13 = arith.constant 0 : index
    %27 = vector.load %arg6[%c0_12, %c0_13] : memref<1x192xf32, #tpu.memory_space<vmem>>, vector<1x192xf32>
    %28 = vector.broadcast %27 : vector<1x192xf32> to vector<16x192xf32>
    %29 = arith.addf %26, %28 : vector<16x192xf32>
    %30 = arith.truncf %29 : vector<16x192xf32> to vector<16x192xbf16>
    %c0_14 = arith.constant 0 : index
    %c0_15 = arith.constant 0 : index
    %31 = vector.load %arg7[%c0_14, %c0_15] : memref<16x192xbf16, #tpu.memory_space<vmem>>, vector<16x192xbf16>
    tpu.vector_store %arg7[%c0_14, %c0_15], %30 {strides = array<i32>} : memref<16x192xbf16, #tpu.memory_space<vmem>>, vector<16x192xbf16>,
    return
  }
  func.func @transform_0(%arg0: i32, %arg1: i32) -> (i32, i32) {
    %c0_i32 = arith.constant 0 : i32
    %c0_i32_0 = arith.constant 0 : i32
    return %arg0, %c0_i32 : i32, i32
  }
  func.func @transform_1(%arg0: i32, %arg1: i32) -> (i32, i32) {
    %c0_i32 = arith.constant 0 : i32
    %c0_i32_0 = arith.constant 0 : i32
    %c0_i32_1 = arith.constant 0 : i32
    return %c0_i32, %c0_i32_0 : i32, i32
  }
  func.func @transform_2(%arg0: i32, %arg1: i32) -> (i32, i32) {
    %c0_i32 = arith.constant 0 : i32
    %c0_i32_0 = arith.constant 0 : i32
    %c0_i32_1 = arith.constant 0 : i32
    return %c0_i32, %c0_i32_0 : i32, i32
  }
  func.func @transform_3(%arg0: i32, %arg1: i32) -> (i32, i32) {
    %c0_i32 = arith.constant 0 : i32
    %c0_i32_0 = arith.constant 0 : i32
    return %c0_i32, %arg1 : i32, i32
  }
  func.func @transform_4(%arg0: i32, %arg1: i32) -> (i32, i32) {
    %c0_i32 = arith.constant 0 : i32
    %c0_i32_0 = arith.constant 0 : i32
    return %c0_i32, %arg1 : i32, i32
  }
  func.func @transform_5(%arg0: i32, %arg1: i32) -> (i32, i32) {
    %c0_i32 = arith.constant 0 : i32
    return %arg0, %arg1 : i32, i32
  }
}

module attributes {stable_mosaic.version = 11 : i64} {
  func.func @_matmul_kernel(%arg0: i32, %arg1: i32, %arg2: i32, %arg3: memref<16x64xbf16, #tpu.memory_space<vmem>>, %arg4: memref<64x64xbf16, #tpu.memory_space<vmem>>, %arg5: memref<1x64xf32, #tpu.memory_space<vmem>>, %arg6: memref<16x64xbf16, #tpu.memory_space<vmem>>, %arg7: memref<16x64xbf16, #tpu.memory_space<vmem>>, %arg8: memref<16x64xf32, #tpu.memory_space<vmem>>) attributes {dimension_semantics = [#tpu.dimension_semantics<parallel>, #tpu.dimension_semantics<parallel>, #tpu.dimension_semantics<arbitrary>], iteration_bounds = array<i64: 3, 1, 1>, scalar_prefetch = 0 : i64, scratch_operands = 1 : i64, tpu.core_type = #tpu.core_type<tc>, window_params = [{transform_indices = @transform_0, window_bounds = array<i64: 16, 64>}, {transform_indices = @transform_1, window_bounds = array<i64: 64, 64>}, {transform_indices = @transform_2, window_bounds = array<i64: 1, 64>}, {transform_indices = @transform_3, window_bounds = array<i64: 16, 64>}, {transform_indices = @transform_4, window_bounds = array<i64: 16, 64>}]} {
    %c0_i32 = arith.constant 0 : i32
    %0 = arith.cmpi eq, %arg2, %c0_i32 : i32
    %1 = arith.extui %0 : i1 to i32
    %c0_i32_0 = arith.constant 0 : i32
    %2 = arith.cmpi ne, %1, %c0_i32_0 : i32
    scf.if %2 {
      %cst_10 = arith.constant 0.000000e+00 : f32
      %12 = vector.broadcast %cst_10 : f32 to vector<16x64xf32>
      %c0_11 = arith.constant 0 : index
      %c0_12 = arith.constant 0 : index
      %13 = vector.load %arg8[%c0_11, %c0_12] : memref<16x64xf32, #tpu.memory_space<vmem>>, vector<16x64xf32>
      tpu.vector_store %arg8[%c0_11, %c0_12], %12 {strides = array<i32>} : memref<16x64xf32, #tpu.memory_space<vmem>>, vector<16x64xf32>,
    } else {
    }
    %c0 = arith.constant 0 : index
    %c0_1 = arith.constant 0 : index
    %3 = vector.load %arg8[%c0, %c0_1] : memref<16x64xf32, #tpu.memory_space<vmem>>, vector<16x64xf32>
    %c0_2 = arith.constant 0 : index
    %c0_3 = arith.constant 0 : index
    %4 = vector.load %arg3[%c0_2, %c0_3] : memref<16x64xbf16, #tpu.memory_space<vmem>>, vector<16x64xbf16>
    %c0_4 = arith.constant 0 : index
    %c0_5 = arith.constant 0 : index
    %5 = vector.load %arg4[%c0_4, %c0_5] : memref<64x64xbf16, #tpu.memory_space<vmem>>, vector<64x64xbf16>
    %cst = arith.constant dense<0.000000e+00> : vector<16x64xf32>
    %6 = tpu.matmul %4, %5, %cst {dimension_numbers = #tpu.dot_dimension_numbers<[1], [0], [0], [1], [0, 0, 1, 1], [], []>} : vector<16x64xbf16>, vector<64x64xbf16>, vector<16x64xf32> -> vector<16x64xf32>
    %7 = arith.addf %3, %6 : vector<16x64xf32>
    %c0_6 = arith.constant 0 : index
    %c0_7 = arith.constant 0 : index
    %8 = vector.load %arg8[%c0_6, %c0_7] : memref<16x64xf32, #tpu.memory_space<vmem>>, vector<16x64xf32>
    tpu.vector_store %arg8[%c0_6, %c0_7], %7 {strides = array<i32>} : memref<16x64xf32, #tpu.memory_space<vmem>>, vector<16x64xf32>,
    %c0_i32_8 = arith.constant 0 : i32
    %9 = arith.cmpi eq, %arg2, %c0_i32_8 : i32
    %10 = arith.extui %9 : i1 to i32
    %c0_i32_9 = arith.constant 0 : i32
    %11 = arith.cmpi ne, %10, %c0_i32_9 : i32
    scf.if %11 {
      %c0_10 = arith.constant 0 : index
      %c0_11 = arith.constant 0 : index
      %12 = vector.load %arg8[%c0_10, %c0_11] : memref<16x64xf32, #tpu.memory_space<vmem>>, vector<16x64xf32>
      %c0_12 = arith.constant 0 : index
      %c0_13 = arith.constant 0 : index
      %13 = vector.load %arg5[%c0_12, %c0_13] : memref<1x64xf32, #tpu.memory_space<vmem>>, vector<1x64xf32>
      %14 = vector.broadcast %13 : vector<1x64xf32> to vector<16x64xf32>
      %15 = arith.addf %12, %14 : vector<16x64xf32>
      %c0_14 = arith.constant 0 : index
      %c0_15 = arith.constant 0 : index
      %16 = vector.load %arg6[%c0_14, %c0_15] : memref<16x64xbf16, #tpu.memory_space<vmem>>, vector<16x64xbf16>
      %17 = arith.extf %16 : vector<16x64xbf16> to vector<16x64xf32>
      %18 = arith.addf %15, %17 : vector<16x64xf32>
      %19 = arith.truncf %18 : vector<16x64xf32> to vector<16x64xbf16>
      %c0_16 = arith.constant 0 : index
      %c0_17 = arith.constant 0 : index
      %20 = vector.load %arg7[%c0_16, %c0_17] : memref<16x64xbf16, #tpu.memory_space<vmem>>, vector<16x64xbf16>
      tpu.vector_store %arg7[%c0_16, %c0_17], %19 {strides = array<i32>} : memref<16x64xbf16, #tpu.memory_space<vmem>>, vector<16x64xbf16>,
    } else {
    }
    return
  }
  func.func @transform_0(%arg0: i32, %arg1: i32, %arg2: i32) -> (i32, i32) {
    %c0_i32 = arith.constant 0 : i32
    return %arg0, %arg2 : i32, i32
  }
  func.func @transform_1(%arg0: i32, %arg1: i32, %arg2: i32) -> (i32, i32) {
    %c0_i32 = arith.constant 0 : i32
    return %arg2, %arg1 : i32, i32
  }
  func.func @transform_2(%arg0: i32, %arg1: i32, %arg2: i32) -> (i32, i32) {
    %c0_i32 = arith.constant 0 : i32
    %c0_i32_0 = arith.constant 0 : i32
    return %c0_i32, %arg1 : i32, i32
  }
  func.func @transform_3(%arg0: i32, %arg1: i32, %arg2: i32) -> (i32, i32) {
    %c0_i32 = arith.constant 0 : i32
    return %arg0, %arg1 : i32, i32
  }
  func.func @transform_4(%arg0: i32, %arg1: i32, %arg2: i32) -> (i32, i32) {
    %c0_i32 = arith.constant 0 : i32
    return %arg0, %arg1 : i32, i32
  }
}

module attributes {stable_mosaic.version = 11 : i64} {
  func.func @_matmul_kernel(%arg0: i32, %arg1: i32, %arg2: i32, %arg3: memref<16x256xbf16, #tpu.memory_space<vmem>>, %arg4: memref<256x64xbf16, #tpu.memory_space<vmem>>, %arg5: memref<1x64xf32, #tpu.memory_space<vmem>>, %arg6: memref<16x64xbf16, #tpu.memory_space<vmem>>, %arg7: memref<16x64xbf16, #tpu.memory_space<vmem>>, %arg8: memref<16x64xf32, #tpu.memory_space<vmem>>) attributes {dimension_semantics = [#tpu.dimension_semantics<parallel>, #tpu.dimension_semantics<parallel>, #tpu.dimension_semantics<arbitrary>], iteration_bounds = array<i64: 3, 1, 1>, scalar_prefetch = 0 : i64, scratch_operands = 1 : i64, tpu.core_type = #tpu.core_type<tc>, window_params = [{transform_indices = @transform_0, window_bounds = array<i64: 16, 256>}, {transform_indices = @transform_1, window_bounds = array<i64: 256, 64>}, {transform_indices = @transform_2, window_bounds = array<i64: 1, 64>}, {transform_indices = @transform_3, window_bounds = array<i64: 16, 64>}, {transform_indices = @transform_4, window_bounds = array<i64: 16, 64>}]} {
    %c0_i32 = arith.constant 0 : i32
    %0 = arith.cmpi eq, %arg2, %c0_i32 : i32
    %1 = arith.extui %0 : i1 to i32
    %c0_i32_0 = arith.constant 0 : i32
    %2 = arith.cmpi ne, %1, %c0_i32_0 : i32
    scf.if %2 {
      %cst_10 = arith.constant 0.000000e+00 : f32
      %12 = vector.broadcast %cst_10 : f32 to vector<16x64xf32>
      %c0_11 = arith.constant 0 : index
      %c0_12 = arith.constant 0 : index
      %13 = vector.load %arg8[%c0_11, %c0_12] : memref<16x64xf32, #tpu.memory_space<vmem>>, vector<16x64xf32>
      tpu.vector_store %arg8[%c0_11, %c0_12], %12 {strides = array<i32>} : memref<16x64xf32, #tpu.memory_space<vmem>>, vector<16x64xf32>,
    } else {
    }
    %c0 = arith.constant 0 : index
    %c0_1 = arith.constant 0 : index
    %3 = vector.load %arg8[%c0, %c0_1] : memref<16x64xf32, #tpu.memory_space<vmem>>, vector<16x64xf32>
    %c0_2 = arith.constant 0 : index
    %c0_3 = arith.constant 0 : index
    %4 = vector.load %arg3[%c0_2, %c0_3] : memref<16x256xbf16, #tpu.memory_space<vmem>>, vector<16x256xbf16>
    %c0_4 = arith.constant 0 : index
    %c0_5 = arith.constant 0 : index
    %5 = vector.load %arg4[%c0_4, %c0_5] : memref<256x64xbf16, #tpu.memory_space<vmem>>, vector<256x64xbf16>
    %cst = arith.constant dense<0.000000e+00> : vector<16x64xf32>
    %6 = tpu.matmul %4, %5, %cst {dimension_numbers = #tpu.dot_dimension_numbers<[1], [0], [0], [1], [0, 0, 1, 1], [], []>} : vector<16x256xbf16>, vector<256x64xbf16>, vector<16x64xf32> -> vector<16x64xf32>
    %7 = arith.addf %3, %6 : vector<16x64xf32>
    %c0_6 = arith.constant 0 : index
    %c0_7 = arith.constant 0 : index
    %8 = vector.load %arg8[%c0_6, %c0_7] : memref<16x64xf32, #tpu.memory_space<vmem>>, vector<16x64xf32>
    tpu.vector_store %arg8[%c0_6, %c0_7], %7 {strides = array<i32>} : memref<16x64xf32, #tpu.memory_space<vmem>>, vector<16x64xf32>,
    %c0_i32_8 = arith.constant 0 : i32
    %9 = arith.cmpi eq, %arg2, %c0_i32_8 : i32
    %10 = arith.extui %9 : i1 to i32
    %c0_i32_9 = arith.constant 0 : i32
    %11 = arith.cmpi ne, %10, %c0_i32_9 : i32
    scf.if %11 {
      %c0_10 = arith.constant 0 : index
      %c0_11 = arith.constant 0 : index
      %12 = vector.load %arg8[%c0_10, %c0_11] : memref<16x64xf32, #tpu.memory_space<vmem>>, vector<16x64xf32>
      %c0_12 = arith.constant 0 : index
      %c0_13 = arith.constant 0 : index
      %13 = vector.load %arg5[%c0_12, %c0_13] : memref<1x64xf32, #tpu.memory_space<vmem>>, vector<1x64xf32>
      %14 = vector.broadcast %13 : vector<1x64xf32> to vector<16x64xf32>
      %15 = arith.addf %12, %14 : vector<16x64xf32>
      %c0_14 = arith.constant 0 : index
      %c0_15 = arith.constant 0 : index
      %16 = vector.load %arg6[%c0_14, %c0_15] : memref<16x64xbf16, #tpu.memory_space<vmem>>, vector<16x64xbf16>
      %17 = arith.extf %16 : vector<16x64xbf16> to vector<16x64xf32>
      %18 = arith.addf %15, %17 : vector<16x64xf32>
      %19 = arith.truncf %18 : vector<16x64xf32> to vector<16x64xbf16>
      %c0_16 = arith.constant 0 : index
      %c0_17 = arith.constant 0 : index
      %20 = vector.load %arg7[%c0_16, %c0_17] : memref<16x64xbf16, #tpu.memory_space<vmem>>, vector<16x64xbf16>
      tpu.vector_store %arg7[%c0_16, %c0_17], %19 {strides = array<i32>} : memref<16x64xbf16, #tpu.memory_space<vmem>>, vector<16x64xbf16>,
    } else {
    }
    return
  }
  func.func @transform_0(%arg0: i32, %arg1: i32, %arg2: i32) -> (i32, i32) {
    %c0_i32 = arith.constant 0 : i32
    return %arg0, %arg2 : i32, i32
  }
  func.func @transform_1(%arg0: i32, %arg1: i32, %arg2: i32) -> (i32, i32) {
    %c0_i32 = arith.constant 0 : i32
    return %arg2, %arg1 : i32, i32
  }
  func.func @transform_2(%arg0: i32, %arg1: i32, %arg2: i32) -> (i32, i32) {
    %c0_i32 = arith.constant 0 : i32
    %c0_i32_0 = arith.constant 0 : i32
    return %c0_i32, %arg1 : i32, i32
  }
  func.func @transform_3(%arg0: i32, %arg1: i32, %arg2: i32) -> (i32, i32) {
    %c0_i32 = arith.constant 0 : i32
    return %arg0, %arg1 : i32, i32
  }
  func.func @transform_4(%arg0: i32, %arg1: i32, %arg2: i32) -> (i32, i32) {
    %c0_i32 = arith.constant 0 : i32
    return %arg0, %arg1 : i32, i32
  }
}

module attributes {stable_mosaic.version = 11 : i64} {
  func.func @_ln_matmul_kernel(%arg0: i32, %arg1: i32, %arg2: memref<16x64xbf16, #tpu.memory_space<vmem>>, %arg3: memref<1x64xf32, #tpu.memory_space<vmem>>, %arg4: memref<1x64xf32, #tpu.memory_space<vmem>>, %arg5: memref<64x256xbf16, #tpu.memory_space<vmem>>, %arg6: memref<1x256xf32, #tpu.memory_space<vmem>>, %arg7: memref<16x256xbf16, #tpu.memory_space<vmem>>) attributes {dimension_semantics = [#tpu.dimension_semantics<parallel>, #tpu.dimension_semantics<parallel>], iteration_bounds = array<i64: 3, 1>, scalar_prefetch = 0 : i64, scratch_operands = 0 : i64, tpu.core_type = #tpu.core_type<tc>, window_params = [{transform_indices = @transform_0, window_bounds = array<i64: 16, 64>}, {pipeline_mode = #tpu.pipeline_mode<synchronous>, transform_indices = @transform_1, window_bounds = array<i64: 1, 64>}, {pipeline_mode = #tpu.pipeline_mode<synchronous>, transform_indices = @transform_2, window_bounds = array<i64: 1, 64>}, {transform_indices = @transform_3, window_bounds = array<i64: 64, 256>}, {transform_indices = @transform_4, window_bounds = array<i64: 1, 256>}, {transform_indices = @transform_5, window_bounds = array<i64: 16, 256>}]} {
    %c0 = arith.constant 0 : index
    %c0_0 = arith.constant 0 : index
    %0 = vector.load %arg2[%c0, %c0_0] : memref<16x64xbf16, #tpu.memory_space<vmem>>, vector<16x64xbf16>
    %1 = arith.extf %0 : vector<16x64xbf16> to vector<16x64xf32>
    %cst = arith.constant dense<0.000000e+00> : vector<16xf32>
    %2 = vector.multi_reduction <add>, %1, %cst [1] : vector<16x64xf32> to vector<16xf32>
    %3 = vector.shape_cast %2 : vector<16xf32> to vector<16x1xf32>
    %cst_1 = arith.constant 6.400000e+01 : f32
    %4 = vector.broadcast %cst_1 : f32 to vector<16x1xf32>
    %5 = arith.divf %3, %4 : vector<16x1xf32>
    %6 = vector.broadcast %5 : vector<16x1xf32> to vector<16x64xf32>
    %7 = arith.subf %1, %6 : vector<16x64xf32>
    %8 = arith.mulf %7, %7 : vector<16x64xf32>
    %cst_2 = arith.constant dense<0.000000e+00> : vector<16xf32>
    %9 = vector.multi_reduction <add>, %8, %cst_2 [1] : vector<16x64xf32> to vector<16xf32>
    %10 = vector.shape_cast %9 : vector<16xf32> to vector<16x1xf32>
    %cst_3 = arith.constant 6.400000e+01 : f32
    %11 = vector.broadcast %cst_3 : f32 to vector<16x1xf32>
    %12 = arith.divf %10, %11 : vector<16x1xf32>
    %cst_4 = arith.constant 9.99999974E-6 : f32
    %13 = vector.broadcast %cst_4 : f32 to vector<16x1xf32>
    %14 = arith.addf %12, %13 : vector<16x1xf32>
    %15 = math.rsqrt %14 : vector<16x1xf32>
    %16 = vector.broadcast %15 : vector<16x1xf32> to vector<16x64xf32>
    %17 = arith.mulf %7, %16 : vector<16x64xf32>
    %c0_5 = arith.constant 0 : index
    %c0_6 = arith.constant 0 : index
    %18 = vector.load %arg3[%c0_5, %c0_6] : memref<1x64xf32, #tpu.memory_space<vmem>>, vector<1x64xf32>
    %19 = vector.broadcast %18 : vector<1x64xf32> to vector<16x64xf32>
    %20 = arith.mulf %17, %19 : vector<16x64xf32>
    %c0_7 = arith.constant 0 : index
    %c0_8 = arith.constant 0 : index
    %21 = vector.load %arg4[%c0_7, %c0_8] : memref<1x64xf32, #tpu.memory_space<vmem>>, vector<1x64xf32>
    %22 = vector.broadcast %21 : vector<1x64xf32> to vector<16x64xf32>
    %23 = arith.addf %20, %22 : vector<16x64xf32>
    %24 = arith.truncf %23 : vector<16x64xf32> to vector<16x64xbf16>
    %c0_9 = arith.constant 0 : index
    %c0_10 = arith.constant 0 : index
    %25 = vector.load %arg5[%c0_9, %c0_10] : memref<64x256xbf16, #tpu.memory_space<vmem>>, vector<64x256xbf16>
    %cst_11 = arith.constant dense<0.000000e+00> : vector<16x256xf32>
    %26 = tpu.matmul %24, %25, %cst_11 {dimension_numbers = #tpu.dot_dimension_numbers<[1], [0], [0], [1], [0, 0, 1, 1], [], []>} : vector<16x64xbf16>, vector<64x256xbf16>, vector<16x256xf32> -> vector<16x256xf32>
    %c0_12 = arith.constant 0 : index
    %c0_13 = arith.constant 0 : index
    %27 = vector.load %arg6[%c0_12, %c0_13] : memref<1x256xf32, #tpu.memory_space<vmem>>, vector<1x256xf32>
    %28 = vector.broadcast %27 : vector<1x256xf32> to vector<16x256xf32>
    %29 = arith.addf %26, %28 : vector<16x256xf32>
    %cst_14 = arith.constant 1.702000e+00 : f32
    %30 = vector.broadcast %cst_14 : f32 to vector<16x256xf32>
    %31 = arith.mulf %30, %29 : vector<16x256xf32>
    %32 = arith.negf %31 : vector<16x256xf32>
    %33 = math.exp %32 : vector<16x256xf32>
    %cst_15 = arith.constant 1.000000e+00 : f32
    %34 = vector.broadcast %cst_15 : f32 to vector<16x256xf32>
    %35 = arith.addf %34, %33 : vector<16x256xf32>
    %36 = arith.divf %34, %35 : vector<16x256xf32>
    %37 = arith.mulf %29, %36 : vector<16x256xf32>
    %38 = arith.truncf %37 : vector<16x256xf32> to vector<16x256xbf16>
    %c0_16 = arith.constant 0 : index
    %c0_17 = arith.constant 0 : index
    %39 = vector.load %arg7[%c0_16, %c0_17] : memref<16x256xbf16, #tpu.memory_space<vmem>>, vector<16x256xbf16>
    tpu.vector_store %arg7[%c0_16, %c0_17], %38 {strides = array<i32>} : memref<16x256xbf16, #tpu.memory_space<vmem>>, vector<16x256xbf16>,
    return
  }
  func.func @transform_0(%arg0: i32, %arg1: i32) -> (i32, i32) {
    %c0_i32 = arith.constant 0 : i32
    %c0_i32_0 = arith.constant 0 : i32
    return %arg0, %c0_i32 : i32, i32
  }
  func.func @transform_1(%arg0: i32, %arg1: i32) -> (i32, i32) {
    %c0_i32 = arith.constant 0 : i32
    %c0_i32_0 = arith.constant 0 : i32
    %c0_i32_1 = arith.constant 0 : i32
    return %c0_i32, %c0_i32_0 : i32, i32
  }
  func.func @transform_2(%arg0: i32, %arg1: i32) -> (i32, i32) {
    %c0_i32 = arith.constant 0 : i32
    %c0_i32_0 = arith.constant 0 : i32
    %c0_i32_1 = arith.constant 0 : i32
    return %c0_i32, %c0_i32_0 : i32, i32
  }
  func.func @transform_3(%arg0: i32, %arg1: i32) -> (i32, i32) {
    %c0_i32 = arith.constant 0 : i32
    %c0_i32_0 = arith.constant 0 : i32
    return %c0_i32, %arg1 : i32, i32
  }
  func.func @transform_4(%arg0: i32, %arg1: i32) -> (i32, i32) {
    %c0_i32 = arith.constant 0 : i32
    %c0_i32_0 = arith.constant 0 : i32
    return %c0_i32, %arg1 : i32, i32
  }
  func.func @transform_5(%arg0: i32, %arg1: i32) -> (i32, i32) {
    %c0_i32 = arith.constant 0 : i32
    return %arg0, %arg1 : i32, i32
  }
}

module attributes {stable_mosaic.version = 11 : i64} {
  func.func @_cls_head_kernel(%arg0: memref<2x64xbf16, #tpu.memory_space<vmem>>, %arg1: memref<1x64xf32, #tpu.memory_space<vmem>>, %arg2: memref<1x64xf32, #tpu.memory_space<vmem>>, %arg3: memref<64x32xbf16, #tpu.memory_space<vmem>>, %arg4: memref<2x32xf32, #tpu.memory_space<vmem>>) attributes {dimension_semantics = [], scalar_prefetch = 0 : i64, scratch_operands = 0 : i64, tpu.core_type = #tpu.core_type<tc>} {
    %c0 = arith.constant 0 : index
    %c0_0 = arith.constant 0 : index
    %0 = vector.load %arg0[%c0, %c0_0] : memref<2x64xbf16, #tpu.memory_space<vmem>>, vector<2x64xbf16>
    %1 = arith.extf %0 : vector<2x64xbf16> to vector<2x64xf32>
    %cst = arith.constant dense<0.000000e+00> : vector<2xf32>
    %2 = vector.multi_reduction <add>, %1, %cst [1] : vector<2x64xf32> to vector<2xf32>
    %3 = vector.shape_cast %2 : vector<2xf32> to vector<2x1xf32>
    %cst_1 = arith.constant 6.400000e+01 : f32
    %4 = vector.broadcast %cst_1 : f32 to vector<2x1xf32>
    %5 = arith.divf %3, %4 : vector<2x1xf32>
    %6 = vector.broadcast %5 : vector<2x1xf32> to vector<2x64xf32>
    %7 = arith.subf %1, %6 : vector<2x64xf32>
    %8 = arith.mulf %7, %7 : vector<2x64xf32>
    %cst_2 = arith.constant dense<0.000000e+00> : vector<2xf32>
    %9 = vector.multi_reduction <add>, %8, %cst_2 [1] : vector<2x64xf32> to vector<2xf32>
    %10 = vector.shape_cast %9 : vector<2xf32> to vector<2x1xf32>
    %cst_3 = arith.constant 6.400000e+01 : f32
    %11 = vector.broadcast %cst_3 : f32 to vector<2x1xf32>
    %12 = arith.divf %10, %11 : vector<2x1xf32>
    %cst_4 = arith.constant 9.99999974E-6 : f32
    %13 = vector.broadcast %cst_4 : f32 to vector<2x1xf32>
    %14 = arith.addf %12, %13 : vector<2x1xf32>
    %15 = math.rsqrt %14 : vector<2x1xf32>
    %16 = vector.broadcast %15 : vector<2x1xf32> to vector<2x64xf32>
    %17 = arith.mulf %7, %16 : vector<2x64xf32>
    %c0_5 = arith.constant 0 : index
    %c0_6 = arith.constant 0 : index
    %18 = vector.load %arg1[%c0_5, %c0_6] : memref<1x64xf32, #tpu.memory_space<vmem>>, vector<1x64xf32>
    %19 = vector.broadcast %18 : vector<1x64xf32> to vector<2x64xf32>
    %20 = arith.mulf %17, %19 : vector<2x64xf32>
    %c0_7 = arith.constant 0 : index
    %c0_8 = arith.constant 0 : index
    %21 = vector.load %arg2[%c0_7, %c0_8] : memref<1x64xf32, #tpu.memory_space<vmem>>, vector<1x64xf32>
    %22 = vector.broadcast %21 : vector<1x64xf32> to vector<2x64xf32>
    %23 = arith.addf %20, %22 : vector<2x64xf32>
    %24 = arith.truncf %23 : vector<2x64xf32> to vector<2x64xbf16>
    %c0_9 = arith.constant 0 : index
    %c0_10 = arith.constant 0 : index
    %25 = vector.load %arg3[%c0_9, %c0_10] : memref<64x32xbf16, #tpu.memory_space<vmem>>, vector<64x32xbf16>
    %cst_11 = arith.constant dense<0.000000e+00> : vector<2x32xf32>
    %26 = tpu.matmul %24, %25, %cst_11 {dimension_numbers = #tpu.dot_dimension_numbers<[1], [0], [0], [1], [0, 0, 1, 1], [], []>} : vector<2x64xbf16>, vector<64x32xbf16>, vector<2x32xf32> -> vector<2x32xf32>
    %27 = arith.mulf %26, %26 : vector<2x32xf32>
    %cst_12 = arith.constant dense<0.000000e+00> : vector<2xf32>
    %28 = vector.multi_reduction <add>, %27, %cst_12 [1] : vector<2x32xf32> to vector<2xf32>
    %29 = vector.shape_cast %28 : vector<2xf32> to vector<2x1xf32>
    %30 = math.sqrt %29 : vector<2x1xf32>
    %31 = vector.broadcast %30 : vector<2x1xf32> to vector<2x32xf32>
    %32 = arith.divf %26, %31 : vector<2x32xf32>
    %c0_13 = arith.constant 0 : index
    %c0_14 = arith.constant 0 : index
    %33 = vector.load %arg4[%c0_13, %c0_14] : memref<2x32xf32, #tpu.memory_space<vmem>>, vector<2x32xf32>
    tpu.vector_store %arg4[%c0_13, %c0_14], %32 {strides = array<i32>} : memref<2x32xf32, #tpu.memory_space<vmem>>, vector<2x32xf32>,
    return
  }
}

</mosaic_0001>

<bundles_post_ra>
// kernel: dmn_get_image_features.13
= control target key start
LH: loop header
LB: loop body
LE: loop exit
PB: predicated region body
PF: predicated region fallthrough
CT: control target
= control target key end

     0   :  { %vm16_vm0 = vcmask 523264   ;;  %v307_v24 = vmov 0.0   ;;  %vm207_vm1 = vcmask 519168   ;;  %s409_s1 = inlined_call_operand.vmem [shape: bf16[192,64], index: 1, kind: input, shape index: {}]   ;;  %s410_s0 = inlined_call_operand.vmem [shape: bf16[32,192], index: 0, kind: input, shape index: {}]   ;;  %s411_s2 = inlined_call_operand.vmem [shape: bf16[32,64], index: 2, kind: output, shape index: {}]  }
   0x1   :  { %v293_v0 = vld [vmem:[%s409_s1 + $0x38] sm:$0xff]  ;;  %v292_v2 = vld [vmem:[%s409_s1 + $0x30] sm:$0xff]  ;;  %v291_v4 = vld [vmem:[%s409_s1 + $0x28] sm:$0xff]  ;;  %17 = vst.msk [vmem:[#allocation2] sm:$0xff] %vm16_vm0, %v307_v24 }
   0x2   :  { %v297_v1 = vld [vmem:[%s409_s1 + $0x58] sm:$0xff]  ;;  %150 = vmatpush.bf16.msra.mxu0 %v293_v0  ;;  %298 = vmatpush.bf16.msra.mxu2 %v293_v0  ;;  %v296_v3 = vld [vmem:[%s409_s1 + $0x50] sm:$0xff]  ;;  %v295_v5 = vld [vmem:[%s409_s1 + $0x48] sm:$0xff]  ;;  %18 = vst.msk [vmem:[#allocation2 + $0x8] sm:$0xff] %vm16_vm0, %v307_v24 }
   0x3   :  { %173 = vmatpush.bf16.msra.mxu1 %v297_v1  ;;  %v290_v6 = vld [vmem:[%s409_s1 + $0x20] sm:$0xff]  ;;  %v220_v9 = vld [vmem:[%s410_s0 + $0x8] sm:$0xf0]  ;;  %v289_v11 = vld [vmem:[%s409_s1 + $0x18] sm:$0xff]  ;;  %19 = vst.msk [vmem:[#allocation2 + $0x10] sm:$0xff] %vm16_vm0, %v307_v24 }
   0x4   :  { %v294_v7 = vld [vmem:[%s409_s1 + $0x40] sm:$0xff]  ;;  %v288_v12 = vld [vmem:[%s409_s1 + $0x10] sm:$0xff]  ;;  %v287_v13 = vld [vmem:[%s409_s1 + $0x8] sm:$0xff]  ;;  %20 = vst.msk [vmem:[#allocation2 + $0x18] sm:$0xff] %vm16_vm0, %v307_v24 }
   0x5   :  { %v282_v8 = vld [vmem:[%s410_s0 + $0x4] sm:$0xf]  ;;  %v218_v15 = vld [vmem:[%s410_s0] sm:$0xf]  ;;  %v283_v16 = vld [vmem:[%s410_s0 + $0x4] sm:$0xf0] }
   0x6   :  { %151 = vmatpush.bf16.msra.mxu0 %v292_v2  ;;  %299 = vmatpush.bf16.msra.mxu2 %v292_v2  ;;  %v223_v10 = vor.u32 %v282_v8, %v220_v9  ;;  %v286_v14 = vld [vmem:[%s409_s1] sm:$0xff]  ;;  %v226_v17 = vld [vmem:[%s410_s0 + $0x10] sm:$0xf]  ;;  %v285_v18 = vld [vmem:[%s410_s0 + $0x14] sm:$0xf0]  ;;  %v219_v21 = vor.u32 %v283_v16, %v218_v15 }
   0x7   :  { %174 = vmatpush.bf16.msra.mxu1 %v296_v3  ;;  %v284_v19 = vld [vmem:[%s410_s0 + $0x14] sm:$0xf]  ;;  %v228_v20 = vld [vmem:[%s410_s0 + $0x18] sm:$0xf0]  ;;  %v227_v22 = vor.u32 %v285_v18, %v226_v17 }
   0x8   :  { %v231_v23 = vor.u32 %v284_v19, %v228_v20  ;;  %v21_v27 = vld [vmem:[#allocation2] sm:$0xff] }
   0x9   :  { %v22_v35 = vld [vmem:[#allocation2 + $0x8] sm:$0xff] }
   0xa   :  { %152 = vmatpush.bf16.msra.mxu0 %v291_v4  ;;  %300 = vmatpush.bf16.msra.mxu2 %v291_v4  ;;  %v23_v32 = vld [vmem:[#allocation2 + $0x10] sm:$0xff] }
   0xb   :  { %175 = vmatpush.bf16.msra.mxu1 %v295_v5  ;;  %v24_v43 = vld [vmem:[#allocation2 + $0x18] sm:$0xff] }
   0xe   :  { %153 = vmatpush.bf16.msra.mxu0 %v290_v6  ;;  %301 = vmatpush.bf16.msra.mxu2 %v290_v6 }
   0xf   :  { %176 = vmatpush.bf16.msra.mxu1 %v294_v7 }
  0x12   :  { %280 = vmatmul.msk.bf16.vlgmr.msra.gmra.mxu1 %vm16_vm0, %v223_v10  ;;  %154 = vmatpush.bf16.msra.mxu0 %v289_v11 }
  0x13   :  { %302 = vmatpush.bf16.msra.mxu2 %v289_v11 }
  0x16   :  { %155 = vmatpush.bf16.msra.mxu0 %v288_v12 }
  0x17   :  { %303 = vmatpush.bf16.msra.mxu2 %v288_v12 }
  0x1a   :  { %156 = vmatpush.bf16.msra.mxu0 %v287_v13 }
  0x1b   :  { %304 = vmatpush.bf16.msra.mxu2 %v287_v13 }
  0x1e   :  { %157 = vmatpush.bf16.msra.mxu0 %v286_v14 }
  0x1f   :  { %305 = vmatpush.bf16.msra.mxu2 %v286_v14 }
  0x21   :  { %158 = vmatmul.bf16.vlgmr.msra.gmra.mxu0 %v219_v21 }
  0x22   :  { %163 = vmatmul.bf16.vlgmr.msra.gmra.mxu2 %v227_v22  ;;  %281 = vmatmul.msk.bf16.gmra.mxu1 %vm16_vm0, %v231_v23 }
  0x8f   :  { %v178_v25 = vpop.f32.mrf.mxu1 }
  0x97   :  { %v180_v26 = vpop.f32.mrf.mxu1 }
  0x9e   :  { %v159_v28 = vpop.f32.mrf.mxu0 }
  0x9f   :  { %v179_v29 = vadd.f32 %v178_v25, %v159_v28  ;;  %v183_v31 = vpop.f32.mrf.mxu1 }
  0xa1   :  { %v188_v30 = vadd.f32 %v179_v29, %v21_v27 }
  0xa3   :  { %192 = vst.msk [vmem:[#allocation2] sm:$0xff] %vm16_vm0, %v188_v30 }
  0xa5   :  { %v164_v33 = vpop.f32.mrf.mxu2 }
  0xa6   :  { %v184_v34 = vadd.f32 %v183_v31, %v164_v33  ;;  %v161_v36 = vpop.f32.mrf.mxu0 }
  0xa7   :  { %v181_v37 = vadd.f32 %v180_v26, %v161_v36  ;;  %v185_v42 = vpop.f32.mrf.mxu1 }
  0xa8   :  { %v190_v38 = vadd.f32 %v184_v34, %v23_v32 }
  0xa9   :  { %v189_v39 = vadd.f32 %v181_v37, %v22_v35 }
  0xaa   :  { %v199_v40 = vld [vmem:[#allocation2] sm:$0xff]  ;;  %194 = vst.msk [vmem:[#allocation2 + $0x10] sm:$0xff] %vm16_vm0, %v190_v38 }
  0xab   :  { %v203_v41 = vpack.c.bf16 %v199_v40, %v199_v40  ;;  %193 = vst.msk [vmem:[#allocation2 + $0x8] sm:$0xff] %vm16_vm0, %v189_v39 }
  0xad   :  { %208 = vst.msk [vmem:[%s411_s2] sm:$0xf] %vm207_vm1, %v203_v41  ;;  %v166_v44 = vpop.f32.mrf.mxu2 }
  0xae   :  { %v186_v45 = vadd.f32 %v185_v42, %v166_v44 }
  0xb0   :  { %v191_v46 = vadd.f32 %v186_v45, %v24_v43 }
  0xb1   :  { %v201_v47 = vld [vmem:[#allocation2 + $0x10] sm:$0xff] }
  0xb2   :  { %v205_v48 = vpack.c.bf16 %v201_v47, %v201_v47  ;;  %v200_v49 = vld [vmem:[#allocation2 + $0x8] sm:$0xff]  ;;  %195 = vst.msk [vmem:[#allocation2 + $0x18] sm:$0xff] %vm16_vm0, %v191_v46 }
  0xb3   :  { %v204_v50 = vpack.c.bf16 %v200_v49, %v200_v49 }
  0xb4   :  { %210 = vst.msk [vmem:[%s411_s2 + $0x8] sm:$0xf] %vm207_vm1, %v205_v48 }
  0xb5   :  { %209 = vst.msk [vmem:[%s411_s2 + $0x4] sm:$0xf] %vm207_vm1, %v204_v50 }
  0xb9   :  { %v202_v51 = vld [vmem:[#allocation2 + $0x18] sm:$0xff] }
  0xba   :  { %v206_v52 = vpack.c.bf16 %v202_v51, %v202_v51 }
  0xbc   :  { %211 = vst.msk [vmem:[%s411_s2 + $0xc] sm:$0xf] %vm207_vm1, %v206_v52 }

// kernel: dmn_get_image_features.14
= control target key start
LH: loop header
LB: loop body
LE: loop exit
PB: predicated region body
PF: predicated region fallthrough
CT: control target
= control target key end

     0   :  { %s364_s12 = smov 0   ;;  %s398_s0 = inlined_call_operand.vmem [shape: bf16[48,64], index: 0, kind: input, shape index: {}]   ;;  %s399_s1 = inlined_call_operand.vmem [shape: f32[1,64], index: 1, kind: input, shape index: {}]   ;;  %s400_s2 = inlined_call_operand.vmem [shape: f32[1,64], index: 2, kind: input, shape index: {}]   ;;  %s401_s3 = inlined_call_operand.vmem [shape: bf16[48,64], index: 3, kind: output, shape index: {}]  }
   0x1 LB: > { %s303_s13 = sadd.s32 4294967295, %s341_s12   ;;  %p307_p0 = scmp.ge.s32.totalorder %s341_s12, 1  ;;  %s341_s12 = sphi %s364_s12, %s13_s12  }
   0x2   : > { %p138_p1 = scmp.lt.s32.totalorder %s341_s12, 4 }
   0x4   : > { %p139_p2 = pnand %p307_p0, %p138_p1 }
   0x5   : > { %s308_s14 = sshll.u32 (!%p139_p2), %s303_s13, 1 }
   0x6   : > { %142 = sbr.rel (%p139_p2) target bundleno = 296 (0x128), region = 32  ;;  %p163_p3 = scmp.lt.s32.totalorder (!%p139_p2), %s308_s14, 5 }
   0xb   : > { %s403_s14 = smov (!%p163_p3, %s308_s14), 5  ;;  %vm178_vm0 = vcmask 523264   ;;  %v343_v5 = vmov 64.0   ;;  %v327_v36 = vld [vmem:[%s399_s1] ss:$0 sm:$0xff]  ;;  %vm244_vm6 = vcmask 519168  }
   0xc   : > { %s309_s15 = sshll.u32 %s403_s14, 2  ;;  %329 = vrcp.f32 %v343_v5  ;;  %v328_v39 = vld [vmem:[%s400_s2] ss:$0 sm:$0xff] }
   0xd   : > { %s166_s18 = scalar_lea.vmem %s398_s0, %s309_s15  ;;  %s172_s25 = scalar_lea.vmem %s401_s3, %s309_s15 }
   0xe   : > { %v315_v0 = vld [vmem:[%s166_s18] sm:$0xff]  }
   0xf   : > { %v316_v1 = vunpack.c.l.bf16 %v315_v0  ;;  %v317_v3 = vunpack.c.h.bf16 %v315_v0 }
  0x11   : > { %v179_v2 = vsel %vm178_vm0, %v316_v1, 0.0  ;;  %v182_v4 = vsel %vm178_vm0, %v317_v3, 0.0 }
  0x12   : > { %180 = vadd.xlane.f32.xlu0 %v179_v2  ;;  %v330_v6 = vpop.eup %329 }
  0x13   : > { %v186_v7 = vmul.f32 64.0, %v330_v6  ;;  %vm190_vm1 = vweird.f32 %v330_v6 }
  0x15   : > { %v187_v8 = vsub.f32 1.0, %v186_v7 }
  0x17   : > { %v188_v9 = vmul.f32 %v330_v6, %v187_v8 }
  0x19   : > { %v189_v10 = vadd.f32 %v330_v6, %v188_v9 }
  0x1a   : > { %183 = vadd.xlane.f32.xlu0 %v182_v4 }
  0x1b   : > { %v191_v11 = vsel %vm190_vm1, %v330_v6, %v189_v10 }
  0x85   : > { %v181_v12 = vpop.xlane.xlu0 %180 }
  0x86   : > { %v192_v13 = vmul.f32 %v191_v11, %v181_v12 }
  0x88   : > { %v194_v14 = vsub.f32 %v316_v1, %v192_v13 }
  0x8a   : > { %v196_v15 = vmul.f32 %v194_v14, %v194_v14 }
  0x8c   : > { %v198_v16 = vsel %vm178_vm0, %v196_v15, 0.0 }
  0x8d   : > { %199 = vadd.xlane.f32.xlu1 %v198_v16  ;;  %v184_v17 = vpop.xlane.xlu0 %183 }
  0x8e   : > { %v193_v18 = vmul.f32 %v191_v11, %v184_v17 }
  0x90   : > { %v195_v19 = vsub.f32 %v317_v3, %v193_v18 }
  0x92   : > { %v197_v20 = vmul.f32 %v195_v19, %v195_v19 }
  0x94   : > { %v201_v21 = vsel %vm178_vm0, %v197_v20, 0.0 }
  0x95   : > { %202 = vadd.xlane.f32.xlu1 %v201_v21 }
 0x100   : > { %v200_v22 = vpop.xlane.xlu1 %199 }
 0x101   : > { %v204_v23 = vmul.f32 %v200_v22, %v191_v11 }
 0x103   : > { %v206_v24 = vadd.f32 1e-05, %v204_v23 }
 0x105   : > { %331 = vrsqrt.f32 %v206_v24  ;;  %vm214_vm3 = vweird.f32 %v206_v24 }
 0x108   : > { %v203_v25 = vpop.xlane.xlu1 %202 }
 0x109   : > { %v205_v26 = vmul.f32 %v203_v25, %v191_v11 }
 0x10b   : > { %v332_v27 = vpop.eup %331  ;;  %v207_v28 = vadd.f32 1e-05, %v205_v26 }
 0x10c   : > { %v209_v29 = vmul.f32 %v332_v27, %v206_v24  ;;  %vm215_vm2 = vweird.f32 %v332_v27 }
 0x10d   : > { %333 = vrsqrt.f32 %v207_v28  ;;  %vm216_vm4 = vmor %vm214_vm3, %vm215_vm2  ;;  %vm224_vm7 = vweird.f32 %v207_v28 }
 0x10e   : > { %v210_v30 = vmul.f32 %v332_v27, %v209_v29 }
 0x110   : > { %v211_v31 = vmul.f32 0.5, %v210_v30 }
 0x112   : > { %v212_v32 = vsub.f32 1.5, %v211_v31 }
 0x113   : > { %v334_v33 = vpop.eup %333 }
 0x114   : > { %v213_v34 = vmul.f32 %v332_v27, %v212_v32  ;;  %v219_v35 = vmul.f32 %v334_v33, %v207_v28  ;;  %vm225_vm5 = vweird.f32 %v334_v33 }
 0x115   : > { %vm226_vm8 = vmor %vm224_vm7, %vm225_vm5 }
 0x116   : > { %v217_v37 = vsel %vm216_vm4, %v332_v27, %v213_v34  ;;  %v220_v38 = vmul.f32 %v334_v33, %v219_v35 }
 0x117   : > { %v228_v40 = vmul.f32 %v217_v37, %v194_v14 }
 0x118   : > { %v221_v41 = vmul.f32 0.5, %v220_v38 }
 0x119   : > { %v234_v42 = vmul.f32 %v327_v36, %v228_v40 }
 0x11a   : > { %v222_v43 = vsub.f32 1.5, %v221_v41 }
 0x11b   : > { %v240_v44 = vadd.f32 %v328_v39, %v234_v42 }
 0x11c   : > { %v223_v45 = vmul.f32 %v334_v33, %v222_v43 }
 0x11d   : > { %v242_v46 = vpack.c.bf16 %v240_v44, %v240_v44 }
 0x11e   : > { %v227_v47 = vsel %vm226_vm8, %v334_v33, %v223_v45 }
 0x11f   : > { %245 = vst.msk [vmem:[%s172_s25] sm:$0xf] %vm244_vm6, %v242_v46  ;;  %v229_v48 = vmul.f32 %v227_v47, %v195_v19 }
 0x121   : > { %v235_v49 = vmul.f32 %v327_v36, %v229_v48 }
 0x123   : > { %v241_v50 = vadd.f32 %v328_v39, %v235_v49 }
 0x125   : > { %v243_v51 = vpack.c.bf16 %v241_v50, %v241_v50 }
 0x127   : > { %246 = vst.msk [vmem:[%s172_s25 + $0x4] sm:$0xf] %vm244_vm6, %v243_v51 }
 0x128 PF: > { %s13_s12 = sadd.s32 1, %s341_s12  }
 0x129   : > { %p10_p4 = scmp.ge.s32.totalorder %s13_s12, 5  }
 0x12b   :  { %12 = sbr.rel (!%p10_p4) target bundleno = 1 (0x1), region = 62 }

// kernel: dmn_get_image_features.15
= control target key start
LH: loop header
LB: loop body
LE: loop exit
PB: predicated region body
PF: predicated region fallthrough
CT: control target
= control target key end

     0   :  { %s716_s18 = smov 0   ;;  %s718_s19 = smov 0   ;;  %s826_s0 = inlined_call_operand.vmem [shape: bf16[48,64], index: 0, kind: input, shape index: {}]   ;;  %s827_s1 = inlined_call_operand.vmem [shape: f32[1,64], index: 1, kind: input, shape index: {}]   ;;  %s828_s2 = inlined_call_operand.vmem [shape: f32[1,64], index: 2, kind: input, shape index: {}]   ;;  %s829_s3 = inlined_call_operand.vmem [shape: bf16[64,192], index: 3, kind: input, shape index: {}]   ;;  %s830_s4 = inlined_call_operand.vmem [shape: f32[1,192], index: 4, kind: input, shape index: {}]   ;;  %s831_s5 = inlined_call_operand.vmem [shape: bf16[48,192], index: 5, kind: output, shape index: {}]  }
   0x1   :  { %s720_s20 = smov 0  }
   0x2 LB: > { %s27_s21 = sadd.s32 1, %s679_s19  ;;  %p573_p0 = scmp.ge.s32.totalorder %s683_s20, 1  ;;  %s683_s20 = sphi %s720_s20, %s15_s20   ;;  %s679_s19 = sphi %s718_s19, %s833_s19   ;;  %s675_s18 = sphi %s716_s18, %s832_s18  }
   0x3   : > { %p29_p1 = scmp.ge.s32.totalorder %s27_s21, 3  ;;  %p223_p2 = scmp.lt.s32.totalorder %s683_s20, 4 }
   0x5   : > { %s835_s21 = smov (%p29_p1, %s27_s21), 0  ;;  %p224_p3 = pnand %p573_p0, %p223_p2 }
   0x6   : > { %s574_s22 = sshll.u32 (!%p224_p3), %s675_s18, 1 }
   0x7   : > { %227 = sbr.rel (%p224_p3) target bundleno = 435 (0x1b3), region = 40  ;;  %p266_p4 = scmp.lt.s32.totalorder (!%p224_p3), %s574_s22, 5 }
   0xc   : > { %s837_s22 = smov (!%p266_p4, %s574_s22), 5  ;;  %vm299_vm0 = vcmask 523264   ;;  %v685_v5 = vmov 64.0   ;;  %v605_v22 = vld [vmem:[%s829_s3 + $0x30] sm:$0xf]  ;;  %vm451_vm8 = vcmask 1043456  }
   0xd   : > { %s575_s23 = sshll.u32 %s837_s22, 2  ;;  %655 = vrcp.f32 %v685_v5  ;;  %v623_v23 = vld [vmem:[%s829_s3 + $0x34] sm:$0xf0]  ;;  %v622_v24 = vld [vmem:[%s829_s3 + $0x34] sm:$0xf]  ;;  %vm452_vm9 = vcmask 523268  }
   0xe   : > { %s269_s26 = scalar_lea.vmem %s826_s0, %s575_s23  ;;  %v606_v25 = vor.u32 %v623_v23, %v605_v22  ;;  %v607_v26 = vld [vmem:[%s829_s3 + $0x38] sm:$0xf0]  ;;  %v597_v28 = vld [vmem:[%s829_s3 + $0x20] sm:$0xf]  ;;  %v621_v29 = vld [vmem:[%s829_s3 + $0x24] sm:$0xf0] }
   0xf   : > { %v625_v0 = vld [vmem:[%s269_s26] sm:$0xff]   ;;  %v610_v27 = vor.u32 %v622_v24, %v607_v26  ;;  %v598_v31 = vor.u32 %v621_v29, %v597_v28  ;;  %v599_v32 = vld [vmem:[%s829_s3 + $0x28] sm:$0xf0]  ;;  %v589_v34 = vld [vmem:[%s829_s3 + $0x10] sm:$0xf]  ;;  %s615_s23 = sshll.u32 %s837_s22, 3 }
  0x10   : > { %v626_v1 = vunpack.c.l.bf16 %v625_v0  ;;  %v627_v3 = vunpack.c.h.bf16 %v625_v0  ;;  %425 = vmatpush.bf16.msra.mxu0 %v606_v25  ;;  %v620_v30 = vld [vmem:[%s829_s3 + $0x24] sm:$0xf]  ;;  %v619_v35 = vld [vmem:[%s829_s3 + $0x14] sm:$0xf0]  ;;  %v618_v36 = vld [vmem:[%s829_s3 + $0x14] sm:$0xf]  ;;  %s291_s26 = scalar_lea.vmem %s831_s5, %s615_s23 }
  0x11   : > { %439 = vmatpush.bf16.msra.mxu1 %v610_v27  ;;  %v602_v33 = vor.u32 %v620_v30, %v599_v32  ;;  %v590_v37 = vor.u32 %v619_v35, %v589_v34  ;;  %v591_v38 = vld [vmem:[%s829_s3 + $0x18] sm:$0xf0]  ;;  %v581_v40 = vld [vmem:[%s829_s3] sm:$0xf]  ;;  %v617_v41 = vld [vmem:[%s829_s3 + $0x4] sm:$0xf0] }
  0x12   : > { %v300_v2 = vsel %vm299_vm0, %v626_v1, 0.0  ;;  %v303_v4 = vsel %vm299_vm0, %v627_v3, 0.0  ;;  %v594_v39 = vor.u32 %v618_v36, %v591_v38  ;;  %v616_v42 = vld [vmem:[%s829_s3 + $0x4] sm:$0xf]  ;;  %v582_v44 = vor.u32 %v617_v41, %v581_v40  ;;  %v583_v45 = vld [vmem:[%s829_s3 + $0x8] sm:$0xf0]  ;;  %vm453_vm10 = vmor %vm452_vm9, %vm451_vm8 }
  0x13   : > { %301 = vadd.xlane.f32.xlu0 %v300_v2  ;;  %v656_v6 = vpop.eup %655  ;;  %v586_v47 = vor.u32 %v616_v42, %v583_v45 }
  0x14   : > { %v307_v7 = vmul.f32 64.0, %v656_v6  ;;  %vm311_vm1 = vweird.f32 %v656_v6  ;;  %426 = vmatpush.bf16.msra.mxu0 %v598_v31 }
  0x15   : > { %440 = vmatpush.bf16.msra.mxu1 %v602_v33 }
  0x16   : > { %v308_v8 = vsub.f32 1.0, %v307_v7 }
  0x18   : > { %v309_v9 = vmul.f32 %v656_v6, %v308_v8  ;;  %427 = vmatpush.bf16.msra.mxu0 %v590_v37 }
  0x19   : > { %441 = vmatpush.bf16.msra.mxu1 %v594_v39 }
  0x1a   : > { %v310_v10 = vadd.f32 %v656_v6, %v309_v9 }
  0x1b   : > { %304 = vadd.xlane.f32.xlu0 %v303_v4 }
  0x1c   : > { %v312_v11 = vsel %vm311_vm1, %v656_v6, %v310_v10  ;;  %428 = vmatpush.bf16.msra.mxu0 %v582_v44  ;;  %v654_v6 = vld [vmem:[%s828_s2] ss:$0 sm:$0xff] }
  0x1d   : > { %442 = vmatpush.bf16.msra.mxu1 %v586_v47 }
  0x86   : > { %v302_v12 = vpop.xlane.xlu0 %301 }
  0x87   : > { %v313_v13 = vmul.f32 %v312_v11, %v302_v12 }
  0x89   : > { %v742_v14 = vsub.f32 %v626_v1, %v313_v13  ;;  %v653_v1 = vld [vmem:[%s827_s1] ss:$0 sm:$0xff] }
  0x8b   : > { %v317_v15 = vmul.f32 %v742_v14, %v742_v14 }
  0x8d   : > { %v319_v16 = vsel %vm299_vm0, %v317_v15, 0.0 }
  0x8e   : > { %320 = vadd.xlane.f32.xlu1 %v319_v16  ;;  %v305_v17 = vpop.xlane.xlu0 %304 }
  0x8f   : > { %v314_v18 = vmul.f32 %v312_v11, %v305_v17 }
  0x91   : > { %v747_v19 = vsub.f32 %v627_v3, %v314_v18 }
  0x93   : > { %v318_v20 = vmul.f32 %v747_v19, %v747_v19 }
  0x95   : > { %v322_v21 = vsel %vm299_vm0, %v318_v20, 0.0 }
  0x96   : > { %323 = vadd.xlane.f32.xlu1 %v322_v21 }
 0x101   : > { %v321_v43 = vpop.xlane.xlu1 %320 }
 0x102   : > { %v325_v46 = vmul.f32 %v321_v43, %v312_v11 }
 0x104   : > { %v327_v48 = vadd.f32 1e-05, %v325_v46 }
 0x106   : > { %657 = vrsqrt.f32 %v327_v48  ;;  %vm335_vm3 = vweird.f32 %v327_v48 }
 0x109   : > { %v324_v49 = vpop.xlane.xlu1 %323 }
 0x10a   : > { %v326_v50 = vmul.f32 %v324_v49, %v312_v11  ;;  %v372_v11 = vld [vmem:[%s830_s4] sm:$0x3] }
 0x10b   : > { %v374_v12 = vperm.slane %v372_v11, 0  ;;  %v375_v13 = vperm.slane %v372_v11, 1 }
 0x10c   : > { %v658_v51 = vpop.eup %657  ;;  %v328_v52 = vadd.f32 1e-05, %v326_v50 }
 0x10d   : > { %v330_v53 = vmul.f32 %v658_v51, %v327_v48  ;;  %vm336_vm2 = vweird.f32 %v658_v51 }
 0x10e   : > { %659 = vrsqrt.f32 %v328_v52  ;;  %vm337_vm4 = vmor %vm335_vm3, %vm336_vm2  ;;  %vm345_vm6 = vweird.f32 %v328_v52 }
 0x10f   : > { %v331_v54 = vmul.f32 %v658_v51, %v330_v53 }
 0x111   : > { %v332_v55 = vmul.f32 0.5, %v331_v54 }
 0x113   : > { %v333_v56 = vsub.f32 1.5, %v332_v55 }
 0x114   : > { %v660_v57 = vpop.eup %659 }
 0x115   : > { %v334_v58 = vmul.f32 %v658_v51, %v333_v56  ;;  %v340_v59 = vmul.f32 %v660_v57, %v328_v52  ;;  %vm346_vm5 = vweird.f32 %v660_v57 }
 0x116   : > { %vm347_vm7 = vmor %vm345_vm6, %vm346_vm5 }
 0x117   : > { %v341_v60 = vmul.f32 %v660_v57, %v340_v59  ;;  %v338_v61 = vsel %vm337_vm4, %v658_v51, %v334_v58 }
 0x118   : > { %v349_v0 = vmul.f32 %v338_v61, %v742_v14 }
 0x119   : > { %v342_v62 = vmul.f32 0.5, %v341_v60 }
 0x11a   : > { %v355_v5 = vmul.f32 %v653_v1, %v349_v0 }
 0x11b   : > { %v343_v63 = vsub.f32 1.5, %v342_v62 }
 0x11c   : > { %v361_v8 = vadd.f32 %v654_v6, %v355_v5 }
 0x11d   : > { %v344_v2 = vmul.f32 %v660_v57, %v343_v63 }
 0x11f   : > { %v348_v3 = vsel %vm347_vm7, %v660_v57, %v344_v2 }
 0x120   : > { %v350_v4 = vmul.f32 %v348_v3, %v747_v19 }
 0x122   : > { %v356_v7 = vmul.f32 %v653_v1, %v350_v4 }
 0x124   : > { %v362_v9 = vadd.f32 %v654_v6, %v356_v7 }
 0x126   : > { %v363_v10 = vpack.c.bf16 %v362_v9, %v361_v8 }
 0x128   : > { %611 = vmatmul.msk.bf16.vlgmr.msra.gmra.mxu0 %vm299_vm0, %v363_v10  ;;  %612 = vmatmul.msk.bf16.vlgmr.msra.gmra.mxu1 %vm299_vm0, %v363_v10 }
 0x1a5   : > { %v430_v14 = vpop.f32.mrf.mxu0  ;;  %v444_v15 = vpop.f32.mrf.mxu1 }
 0x1a6   : > { %v431_v16 = vadd.f32 %v430_v14, %v374_v12  ;;  %v445_v17 = vadd.f32 %v444_v15, %v375_v13 }
 0x1a8   : > { %v449_v18 = vpack.c.bf16 %v445_v17, %v431_v16 }
 0x1aa   : > { %454 = vst.msk [vmem:[%s291_s26] sm:$0xff] %vm453_vm10, %v449_v18 }
 0x1ad   : > { %v432_v19 = vpop.f32.mrf.mxu0  ;;  %v446_v20 = vpop.f32.mrf.mxu1 }
 0x1ae   : > { %v433_v21 = vadd.f32 %v432_v19, %v374_v12  ;;  %v447_v22 = vadd.f32 %v446_v20, %v375_v13 }
 0x1b0   : > { %v450_v23 = vpack.c.bf16 %v447_v22, %v433_v21 }
 0x1b2   : > { %455 = vst.msk [vmem:[%s291_s26 + $0x8] sm:$0xff] %vm453_vm10, %v450_v23 }
 0x1b3 PF: > { %s15_s20 = sadd.s32 1, %s683_s20   ;;  %s832_s18 = smov %s679_s19 }
 0x1b4   : > { %p12_p5 = scmp.ge.s32.totalorder %s15_s20, 5   ;;  %s833_s19 = smov %s835_s21 }
 0x1b6   :  { %14 = sbr.rel (!%p12_p5) target bundleno = 2 (0x2), region = 76 }

// kernel: dmn_get_image_features.16
= control target key start
LH: loop header
LB: loop body
LE: loop exit
PB: predicated region body
PF: predicated region fallthrough
CT: control target
= control target key end

     0   :  { %s828_s6 = smov 0   ;;  %s1016_s0 = inlined_call_operand.vmem [shape: bf16[2,24,192], index: 0, kind: input, shape index: {}]   ;;  %s1017_s1 = inlined_call_operand.vmem [shape: bf16[2,24,64], index: 1, kind: output, shape index: {}]  }
   0x1 LB: > { %s686_s7 = sadd.s32 4294967295, %s808_s6   ;;  %p690_p0 = scmp.ge.s32.totalorder %s808_s6, 1  ;;  %s808_s6 = sphi %s828_s6, %s11_s6  }
   0x2   : > { %p87_p1 = scmp.lt.s32.totalorder %s808_s6, 3 }
   0x4   : > { %p88_p2 = pnand %p690_p0, %p87_p1 }
   0x5   : > { %p107_p3 = scmp.lt.s32.totalorder (!%p88_p2), %s686_s7, 1  ;;  %s810_s12 = smov (!%p88_p2), 64  }
   0x6   : > { %91 = sbr.rel (%p88_p2) target bundleno = 1363 (0x553), region = 24  ;;  %s811_s13 = smov (!%p88_p2), 48  }
   0x7   : > { %s813_s14 = smov (!%p88_p2), 112   ;;  %s814_s15 = smov (!%p88_p2), 32  }
   0x8   : > { %s815_s16 = smov (!%p88_p2), 16   ;;  %s816_s17 = smov (!%p88_p2), 80  }
   0x9   : > { %s817_s18 = smov (!%p88_p2), 96  }
   0xb   : > { %s1019_s7 = smov (!%p107_p3, %s686_s7), 1  ;;  %vm137_vm0 = vcmask 130048   ;;  %v121_v10 = vlaneseq  ;;  %v812_v13 = vmov -1e+30   ;;  %vm174_vm2 = vcmask 195584  }
   0xc   : > { %s721_s8 = smul.u32 24, %s1019_s7  ;;  %vm222_vm3 = vcmask 1043456   ;;  %vm616_vm4 = vcmask 261120   ;;  %vm620_vm5 = vcmask 392192   ;;  %vm627_vm6 = vcmask 519168  }
   0xd   : > { %v122_v11 = vand.u32 127, %v121_v10  ;;  %s722_s19 = smul.u32 12, %s1019_s7 }
   0xe   : > { %s842_s11 = scalar_lea.vmem %s1016_s0, %s721_s8 }
   0xf   : > { %v120_v0 = vld [vmem:[%s842_s11 + $0x10] sm:$0xff]  ;;  %v695_v3 = vld [vmem:[%s842_s11] sm:$0xf]  ;;  %v720_v4 = vld [vmem:[%s842_s11 + $0x4] sm:$0xf0]  ;;  %vm123_vm1 = vcmp.lt.s32.totalorder %v122_v11, 17  ;;  %s116_s22 = scalar_lea.vmem %s1017_s1, %s722_s19 }
  0x10   : > { %v130_v1 = vunpack.c.l.b16 %v120_v0  ;;  %v850_v5 = vor.u32 %v720_v4, %v695_v3  ;;  %v861_v14 = vsel %vm123_vm1, 0.0, %v812_v13  ;;  %v212_v28 = vunpack.c.h.b16 %v120_v0  ;;  %v719_v33 = vld [vmem:[%s842_s11 + $0x4] sm:$0xf]  ;;  %v699_v34 = vld [vmem:[%s842_s11 + $0x8] sm:$0xf0] }
  0x11   : > { %v885_v35 = vor.u32 %v719_v33, %v699_v34 }
  0x12   : > { %v845_v2 = vpack.c.b16 %v130_v1, %v130_v1  ;;  %v879_v30 = vpack.c.b16 %v212_v28, %v212_v28 }
  0x14   : > { %135 = vrot.lane.b32.xlu0 %v845_v2, %s810_s12  ;;  %v224_v32 = vsel %vm222_vm3, %v879_v30, 0 }
  0x15   : > { %232 = vmatpush.bf16.msra.mxu1 %v224_v32 }
  0x19   : > { %233 = vmatpush.bf16.msra.mxu1 %v885_v35 }
  0x1c   : > { %133 = vrot.lane.b32.xlu0 %v850_v5, %s810_s12 }
  0x24   : > { %248 = vrot.lane.b32.xlu0 %v850_v5, %s811_s13 }
  0x86   : > { %v136_v6 = vpop.permute.xlu0 %135 }
  0x87   : > { %v148_v7 = vsel %vm137_vm0, %v136_v6, 0 }
  0x88   : > { %156 = vmatpush.bf16.xpose.msra.mxu0 %v148_v7 }
  0x8e   : > { %v134_v8 = vpop.permute.xlu0 %133 }
  0x8f   : > { %v145_v9 = vsel %vm137_vm0, %v134_v8, 0 }
  0x90   : > { %157 = vmatpush.bf16.xpose.msra.mxu0 %v145_v9 }
  0x96   : > { %v249_v50 = vpop.permute.xlu0 %248 }
  0x97   : > { %697 = vmatmul.msk.bf16.vlgmr.msra.gmra.mxu0 %vm137_vm0, %v850_v5  ;;  %v259_v51 = vsel %vm137_vm0, %v249_v50, 0 }
  0xa7   : > { %698 = vmatmul.msk.bf16.gmra.mxu0 %vm137_vm0, %v845_v2 }
 0x114   : > { %v159_v12 = vpop.f32.mrf.mxu0 }
 0x115   : > { %v168_v15 = vmul.f32 0.25, %v159_v12 }
 0x117   : > { %v171_v16 = vadd.f32 %v168_v15, %v861_v14 }
 0x119   : > { %v175_v17 = vsel %vm174_vm2, %v171_v16, -inf }
 0x11a   : > { %176 = vmax.xlane.f32.xlu1 %v175_v17 }
 0x11c   : > { %v161_v18 = vpop.f32.mrf.mxu0 }
 0x11d   : > { %v169_v19 = vmul.f32 0.25, %v161_v18 }
 0x11f   : > { %v172_v20 = vadd.f32 %v169_v19, %v861_v14 }
 0x121   : > { %v178_v21 = vsel %vm174_vm2, %v172_v20, -inf }
 0x122   : > { %179 = vmax.xlane.f32.xlu1 %v178_v21 }
 0x124   : > { %v164_v22 = vpop.f32.mrf.mxu0 }
 0x125   : > { %v170_v23 = vmul.f32 0.25, %v164_v22 }
 0x127   : > { %v173_v24 = vadd.f32 %v170_v23, %v861_v14 }
 0x129   : > { %v181_v25 = vsel %vm174_vm2, %v173_v24, -inf }
 0x12a   : > { %182 = vmax.xlane.f32.xlu2 %v181_v25 }
 0x12c   : > { %v166_v26 = vpop.f32.mrf.mxu0 }
 0x13b   : > { %244 = vrot.lane.b32.xlu1 %v850_v5, %s813_s14 }
 0x142   : > { %250 = vrot.lane.b32.xlu2 %v845_v2, %s811_s13 }
 0x143   : > { %361 = vrot.lane.b32.xlu1 %v845_v2, %s814_s15 }
 0x14b   : > { %472 = vrot.lane.b32.xlu1 %v845_v2, %s815_s16 }
 0x153   : > { %246 = vrot.lane.b32.xlu1 %v845_v2, %s813_s14 }
 0x18d   : > { %v177_v27 = vpop.xlane.xlu1 %176 }
 0x18e   : > { %v184_v29 = vsub.f32 %v171_v16, %v177_v27 }
 0x190   : > { %v187_v31 = vmul.f32 1.442695, %v184_v29 }
 0x192   : > { %754 = vpow2.f32 %v187_v31 }
 0x195   : > { %v180_v36 = vpop.xlane.xlu1 %179 }
 0x196   : > { %v185_v37 = vsub.f32 %v172_v20, %v180_v36 }
 0x198   : > { %v755_v38 = vpop.eup %754  ;;  %v189_v39 = vmul.f32 1.442695, %v185_v37 }
 0x199   : > { %v193_v40 = vsel %vm174_vm2, %v755_v38, 0.0 }
 0x19a   : > { %756 = vpow2.f32 %v189_v39  ;;  %194 = vadd.xlane.f32.xlu1 %v193_v40 }
 0x19d   : > { %v183_v41 = vpop.xlane.xlu2 %182 }
 0x19e   : > { %v186_v42 = vsub.f32 %v173_v24, %v183_v41 }
 0x1a0   : > { %v757_v43 = vpop.eup %756  ;;  %v191_v44 = vmul.f32 1.442695, %v186_v42 }
 0x1a1   : > { %v196_v45 = vsel %vm174_vm2, %v757_v43, 0.0 }
 0x1a2   : > { %758 = vpow2.f32 %v191_v44  ;;  %197 = vadd.xlane.f32.xlu0 %v196_v45 }
 0x1a5   : > { %v251_v46 = vpop.permute.xlu2 %250 }
 0x1a6   : > { %v262_v47 = vsel %vm137_vm0, %v251_v46, 0 }
 0x1a7   : > { %270 = vmatpush.bf16.xpose.msra.mxu2 %v262_v47 }
 0x1a8   : > { %v759_v48 = vpop.eup %758 }
 0x1a9   : > { %v199_v49 = vsel %vm174_vm2, %v759_v48, 0.0 }
 0x1aa   : > { %200 = vadd.xlane.f32.xlu2 %v199_v49 }
 0x1ad   : > { %v245_v52 = vpop.permute.xlu1 %244 }
 0x1af   : > { %271 = vmatpush.bf16.xpose.msra.mxu2 %v259_v51 }
 0x1b3   : > { %470 = vrot.lane.b32.xlu1 %v850_v5, %s815_s16 }
 0x1b5   : > { %v362_v53 = vpop.permute.xlu1 %361 }
 0x1b6   : > { %705 = vmatmul.msk.bf16.vlgmr.msra.gmra.mxu2 %vm137_vm0, %v245_v52  ;;  %v373_v54 = vsel %vm137_vm0, %v362_v53, 0  ;;  %359 = vrot.lane.b32.xlu0 %v850_v5, %s814_s15 }
 0x1b7   : > { %381 = vmatpush.bf16.xpose.msrb.mxu1 %v373_v54 }
 0x1bb   : > { %466 = vrot.lane.b32.xlu1 %v850_v5, %s816_s17 }
 0x1bd   : > { %v473_v55 = vpop.permute.xlu1 %472 }
 0x1be   : > { %v484_v56 = vsel %vm137_vm0, %v473_v55, 0  ;;  %357 = vrot.lane.b32.xlu0 %v845_v2, %s817_s18 }
 0x1bf   : > { %492 = vmatpush.bf16.xpose.msrb.mxu0 %v484_v56 }
 0x1c2   : > { %355 = vrot.lane.b32.xlu2 %v850_v5, %s817_s18 }
 0x1c3   : > { %468 = vrot.lane.b32.xlu1 %v845_v2, %s816_s17 }
 0x1c5   : > { %v247_v57 = vpop.permute.xlu1 %246 }
 0x1c6   : > { %706 = vmatmul.msk.bf16.gmra.mxu2 %vm137_vm0, %v247_v57 }
 0x20d   : > { %v195_v58 = vpop.xlane.xlu1 %194 }
 0x20e   : > { %760 = vrcp.f32 %v195_v58 }
 0x214   : > { %v761_v60 = vpop.eup %760 }
 0x215   : > { %v198_v59 = vpop.xlane.xlu0 %197  ;;  %v205_v62 = vmul.f32 %v761_v60, %v755_v38 }
 0x216   : > { %762 = vrcp.f32 %v198_v59 }
 0x21c   : > { %v763_v61 = vpop.eup %762 }
 0x21d   : > { %v206_v63 = vmul.f32 %v763_v61, %v757_v43  ;;  %v201_v0 = vpop.xlane.xlu2 %200 }
 0x21e   : > { %764 = vrcp.f32 %v201_v0 }
 0x21f   : > { %v208_v1 = vpack.c.bf16 %v206_v63, %v205_v62 }
 0x221   : > { %703 = vmatmul.msk.bf16.vlgmr.msra.gmra.mxu1 %vm174_vm2, %v208_v1 }
 0x224   : > { %v765_v2 = vpop.eup %764 }
 0x225   : > { %v471_v3 = vpop.permute.xlu1 %470  ;;  %v207_v7 = vmul.f32 %v765_v2, %v759_v48  ;;  %v356_v16 = vpop.permute.xlu2 %355 }
 0x226   : > { %v481_v4 = vsel %vm137_vm0, %v471_v3, 0 }
 0x227   : > { %493 = vmatpush.bf16.xpose.msrb.mxu0 %v481_v4  ;;  %v209_v9 = vpack.c.bf16 %v207_v7, %v207_v7 }
 0x228   : > { %v360_v5 = vpop.permute.xlu0 %359 }
 0x229   : > { %v370_v6 = vsel %vm137_vm0, %v360_v5, 0 }
 0x22a   : > { %382 = vmatpush.bf16.xpose.msrb.mxu1 %v370_v6 }
 0x22d   : > { %v467_v8 = vpop.permute.xlu1 %466 }
 0x22e   : > { %713 = vmatmul.msk.bf16.vlgmr.msrb.gmra.mxu0 %vm137_vm0, %v467_v8 }
 0x230   : > { %v358_v25 = vpop.permute.xlu0 %357 }
 0x231   : > { %704 = vmatmul.msk.bf16.gmra.mxu1 %vm174_vm2, %v209_v9 }
 0x235   : > { %v469_v12 = vpop.permute.xlu1 %468 }
 0x239   : > { %v273_v10 = vpop.f32.mrf.mxu2 }
 0x23a   : > { %v282_v11 = vmul.f32 0.25, %v273_v10 }
 0x23c   : > { %v285_v13 = vadd.f32 %v282_v11, %v861_v14 }
 0x23e   : > { %714 = vmatmul.msk.bf16.gmra.mxu0 %vm137_vm0, %v469_v12  ;;  %v288_v15 = vsel %vm174_vm2, %v285_v13, -inf }
 0x23f   : > { %289 = vmax.xlane.f32.xlu0 %v288_v15 }
 0x241   : > { %v275_v17 = vpop.f32.mrf.mxu2  ;;  %709 = vmatmul.msk.bf16.vlgmr.msrb.gmra.mxu1 %vm137_vm0, %v356_v16 }
 0x242   : > { %v283_v18 = vmul.f32 0.25, %v275_v17 }
 0x244   : > { %v286_v19 = vadd.f32 %v283_v18, %v861_v14 }
 0x246   : > { %v291_v20 = vsel %vm174_vm2, %v286_v19, -inf }
 0x247   : > { %292 = vmax.xlane.f32.xlu1 %v291_v20 }
 0x249   : > { %v278_v21 = vpop.f32.mrf.mxu2 }
 0x24a   : > { %v284_v22 = vmul.f32 0.25, %v278_v21 }
 0x24c   : > { %v287_v23 = vadd.f32 %v284_v22, %v861_v14 }
 0x24e   : > { %v294_v24 = vsel %vm174_vm2, %v287_v23, -inf }
 0x24f   : > { %295 = vmax.xlane.f32.xlu2 %v294_v24 }
 0x251   : > { %v280_v26 = vpop.f32.mrf.mxu2  ;;  %710 = vmatmul.msk.bf16.gmra.mxu1 %vm137_vm0, %v358_v25 }
 0x29e   : > { %v923_v27 = vpop.f32.mrf.mxu1 }
 0x2a6   : > { %v925_v28 = vpop.f32.mrf.mxu1 }
 0x2ab   : > { %v495_v29 = vpop.f32.mrf.mxu0 }
 0x2ac   : > { %v504_v31 = vmul.f32 0.25, %v495_v29 }
 0x2ae   : > { %v927_v32 = vpop.f32.mrf.mxu1  ;;  %v507_v33 = vadd.f32 %v504_v31, %v861_v14 }
 0x2b0   : > { %v510_v34 = vsel %vm174_vm2, %v507_v33, -inf }
 0x2b1   : > { %511 = vmax.xlane.f32.xlu1 %v510_v34 }
 0x2b2   : > { %v290_v36 = vpop.xlane.xlu0 %289 }
 0x2b3   : > { %v297_v37 = vsub.f32 %v285_v13, %v290_v36  ;;  %v497_v38 = vpop.f32.mrf.mxu0 }
 0x2b4   : > { %v505_v39 = vmul.f32 0.25, %v497_v38 }
 0x2b5   : > { %v300_v40 = vmul.f32 1.442695, %v297_v37 }
 0x2b6   : > { %v242_v41 = vpop.f32.mrf.mxu1  ;;  %v508_v42 = vadd.f32 %v505_v39, %v861_v14 }
 0x2b7   : > { %766 = vpow2.f32 %v300_v40 }
 0x2b8   : > { %v513_v43 = vsel %vm174_vm2, %v508_v42, -inf }
 0x2b9   : > { %514 = vmax.xlane.f32.xlu0 %v513_v43 }
 0x2ba   : > { %v293_v44 = vpop.xlane.xlu1 %292 }
 0x2bb   : > { %v298_v45 = vsub.f32 %v286_v19, %v293_v44  ;;  %v500_v46 = vpop.f32.mrf.mxu0 }
 0x2bc   : > { %v506_v47 = vmul.f32 0.25, %v500_v46 }
 0x2bd   : > { %v933_v48 = vpop.eup %766  ;;  %v302_v49 = vmul.f32 1.442695, %v298_v45 }
 0x2be   : > { %v936_v50 = vadd.f32 %v506_v47, %v861_v14  ;;  %v384_v51 = vpop.f32.mrf.mxu1  ;;  %v306_v54 = vsel %vm174_vm2, %v933_v48, 0.0 }
 0x2bf   : > { %768 = vpow2.f32 %v302_v49  ;;  %v393_v52 = vmul.f32 0.25, %v384_v51 }
 0x2c0   : > { %v516_v53 = vsel %vm174_vm2, %v936_v50, -inf }
 0x2c1   : > { %517 = vmax.xlane.f32.xlu1 %v516_v53  ;;  %307 = vadd.xlane.f32.xlu0 %v306_v54  ;;  %v396_v56 = vadd.f32 %v393_v52, %v861_v14 }
 0x2c2   : > { %v296_v55 = vpop.xlane.xlu2 %295 }
 0x2c3   : > { %v299_v57 = vsub.f32 %v287_v23, %v296_v55  ;;  %v502_v58 = vpop.f32.mrf.mxu0  ;;  %v399_v62 = vsel %vm174_vm2, %v396_v56, -inf }
 0x2c5   : > { %v769_v59 = vpop.eup %768  ;;  %v304_v60 = vmul.f32 1.442695, %v299_v57 }
 0x2c6   : > { %v309_v61 = vsel %vm174_vm2, %v769_v59, 0.0  ;;  %v386_v1 = vpop.f32.mrf.mxu1 }
 0x2c7   : > { %770 = vpow2.f32 %v304_v60  ;;  %310 = vadd.xlane.f32.xlu2 %v309_v61  ;;  %v394_v2 = vmul.f32 0.25, %v386_v1 }
 0x2c9   : > { %400 = vmax.xlane.f32.xlu0 %v399_v62  ;;  %v397_v5 = vadd.f32 %v394_v2, %v861_v14 }
 0x2cb   : > { %v402_v7 = vsel %vm174_vm2, %v397_v5, -inf }
 0x2cd   : > { %v945_v63 = vpop.eup %770 }
 0x2ce   : > { %v312_v0 = vsel %vm174_vm2, %v945_v63, 0.0  ;;  %v389_v3 = vpop.f32.mrf.mxu1 }
 0x2cf   : > { %313 = vadd.xlane.f32.xlu2 %v312_v0  ;;  %v395_v6 = vmul.f32 0.25, %v389_v3 }
 0x2d1   : > { %v398_v8 = vadd.f32 %v395_v6, %v861_v14 }
 0x2d3   : > { %v405_v9 = vsel %vm174_vm2, %v398_v8, -inf }
 0x2d6   : > { %v391_v4 = vpop.f32.mrf.mxu1 }
 0x2da   : > { %325 = vrot.lane.b32.xlu1 %v879_v30, %s813_s14 }
 0x2dd   : > { %323 = vrot.lane.b32.xlu0 %v885_v35, %s813_s14 }
 0x2e7   : > { %436 = vrot.lane.b32.xlu2 %v879_v30, %s817_s18 }
 0x2ef   : > { %547 = vrot.lane.b32.xlu2 %v879_v30, %s816_s17 }
 0x318   : > { %403 = vmax.xlane.f32.xlu2 %v402_v7 }
 0x320   : > { %406 = vmax.xlane.f32.xlu2 %v405_v9 }
 0x324   : > { %v512_v10 = vpop.xlane.xlu1 %511 }
 0x325   : > { %v519_v11 = vsub.f32 %v507_v33, %v512_v10 }
 0x327   : > { %v522_v12 = vmul.f32 1.442695, %v519_v11 }
 0x329   : > { %772 = vpow2.f32 %v522_v12 }
 0x32c   : > { %v515_v30 = vpop.xlane.xlu0 %514 }
 0x32d   : > { %v520_v13 = vsub.f32 %v508_v42, %v515_v30 }
 0x32f   : > { %v961_v15 = vpop.eup %772  ;;  %v524_v16 = vmul.f32 1.442695, %v520_v13 }
 0x330   : > { %v528_v17 = vsel %vm174_vm2, %v961_v15, 0.0 }
 0x331   : > { %774 = vpow2.f32 %v524_v16  ;;  %529 = vadd.xlane.f32.xlu0 %v528_v17 }
 0x334   : > { %v308_v18 = vpop.xlane.xlu0 %307  ;;  %v518_v25 = vpop.xlane.xlu1 %517 }
 0x335   : > { %v521_v4 = vsub.f32 %v936_v50, %v518_v25 }
 0x337   : > { %v775_v19 = vpop.eup %774  ;;  %v526_v2 = vmul.f32 1.442695, %v521_v4 }
 0x338   : > { %v531_v14 = vsel %vm174_vm2, %v775_v19, 0.0 }
 0x339   : > { %532 = vadd.xlane.f32.xlu1 %v531_v14 }
 0x33a   : > { %v311_v20 = vpop.xlane.xlu2 %310 }
 0x33c   : > { %v401_v21 = vpop.xlane.xlu0 %400 }
 0x33d   : > { %v408_v22 = vsub.f32 %v396_v56, %v401_v21 }
 0x33f   : > { %v411_v23 = vmul.f32 1.442695, %v408_v22 }
 0x341   : > { %776 = vpow2.f32 %v411_v23 }
 0x342   : > { %v314_v24 = vpop.xlane.xlu2 %313  ;;  %778 = vrcp.f32 %v311_v20 }
 0x343   : > { %780 = vrcp.f32 %v308_v18 }
 0x344   : > { %782 = vrcp.f32 %v314_v24 }
 0x345   : > { %545 = vrot.lane.b32.xlu0 %v885_v35, %s816_s17 }
 0x347   : > { %v968_v26 = vpop.eup %776 }
 0x348   : > { %v417_v29 = vsel %vm174_vm2, %v968_v26, 0.0  ;;  %v779_v33 = vpop.eup %778 }
 0x349   : > { %418 = vadd.xlane.f32.xlu2 %v417_v29  ;;  %v781_v37 = vpop.eup %780  ;;  %v319_v39 = vmul.f32 %v779_v33, %v769_v59 }
 0x34a   : > { %v437_v31 = vpop.permute.xlu2 %436  ;;  %v318_v40 = vmul.f32 %v781_v37, %v933_v48  ;;  %v783_v45 = vpop.eup %782 }
 0x34b   : > { %v446_v42 = vsel %vm222_vm3, %v437_v31, 0  ;;  %v320_v46 = vmul.f32 %v783_v45, %v945_v63 }
 0x34c   : > { %v326_v34 = vpop.permute.xlu1 %325  ;;  %v321_v44 = vpack.c.bf16 %v319_v39, %v318_v40 }
 0x34d   : > { %v335_v36 = vsel %vm222_vm3, %v326_v34, 0  ;;  %v322_v47 = vpack.c.bf16 %v320_v46, %v320_v46 }
 0x34e   : > { %343 = vmatpush.bf16.msra.mxu3 %v335_v36 }
 0x34f   : > { %v324_v38 = vpop.permute.xlu0 %323 }
 0x352   : > { %v548_v41 = vpop.permute.xlu2 %547  ;;  %344 = vmatpush.bf16.msra.mxu3 %v324_v38 }
 0x353   : > { %v557_v43 = vsel %vm222_vm3, %v548_v41, 0 }
 0x354   : > { %565 = vmatpush.bf16.msrb.mxu2 %v557_v43 }
 0x355   : > { %707 = vmatmul.msk.bf16.vlgmr.msra.gmra.mxu3 %vm174_vm2, %v321_v44 }
 0x356   : > { %454 = vmatpush.bf16.msrb.mxu3 %v446_v42 }
 0x365   : > { %708 = vmatmul.msk.bf16.gmra.mxu3 %vm174_vm2, %v322_v47 }
 0x38b   : > { %v404_v49 = vpop.xlane.xlu2 %403 }
 0x38c   : > { %v409_v48 = vsub.f32 %v397_v5, %v404_v49 }
 0x38e   : > { %v413_v51 = vmul.f32 1.442695, %v409_v48 }
 0x390   : > { %784 = vpow2.f32 %v413_v51 }
 0x393   : > { %v407_v52 = vpop.xlane.xlu2 %406 }
 0x394   : > { %v410_v53 = vsub.f32 %v398_v8, %v407_v52 }
 0x396   : > { %v785_v54 = vpop.eup %784  ;;  %v415_v55 = vmul.f32 1.442695, %v410_v53 }
 0x397   : > { %v420_v56 = vsel %vm174_vm2, %v785_v54, 0.0 }
 0x398   : > { %786 = vpow2.f32 %v415_v55  ;;  %421 = vadd.xlane.f32.xlu2 %v420_v56 }
 0x39e   : > { %v787_v57 = vpop.eup %786 }
 0x39f   : > { %v423_v58 = vsel %vm174_vm2, %v787_v57, 0.0 }
 0x3a0   : > { %424 = vadd.xlane.f32.xlu1 %v423_v58 }
 0x3a4   : > { %v530_v59 = vpop.xlane.xlu0 %529 }
 0x3ac   : > { %v533_v60 = vpop.xlane.xlu1 %532 }
 0x3ad   : > { %788 = vrcp.f32 %v533_v60 }
 0x3ae   : > { %790 = vrcp.f32 %v530_v59 }
 0x3af   : > { %792 = vpow2.f32 %v526_v2 }
 0x3b0   : > { %434 = vrot.lane.b32.xlu2 %v885_v35, %s817_s18 }
 0x3b3   : > { %v789_v61 = vpop.eup %788 }
 0x3b4   : > { %v791_v62 = vpop.eup %790  ;;  %v541_v63 = vmul.f32 %v789_v61, %v775_v19 }
 0x3b5   : > { %v540_v0 = vmul.f32 %v791_v62, %v961_v15  ;;  %v793_v5 = vpop.eup %792 }
 0x3b6   : > { %v534_v7 = vsel %vm174_vm2, %v793_v5, 0.0 }
 0x3b7   : > { %v546_v1 = vpop.permute.xlu0 %545  ;;  %v543_v3 = vpack.c.bf16 %v541_v63, %v540_v0 }
 0x3b8   : > { %566 = vmatpush.bf16.msrb.mxu2 %v546_v1 }
 0x3bb   : > { %715 = vmatmul.msk.bf16.vlgmr.msrb.gmra.mxu2 %vm174_vm2, %v543_v3 }
 0x3bc   : > { %v419_v11 = vpop.xlane.xlu2 %418 }
 0x3bd   : > { %794 = vrcp.f32 %v419_v11 }
 0x3c3   : > { %v795_v50 = vpop.eup %794 }
 0x3c4   : > { %v429_v13 = vmul.f32 %v795_v50, %v968_v26 }
 0x3d8   : > { %v346_v6 = vpop.f32.mrf.mxu3 }
 0x3d9   : > { %535 = vadd.xlane.f32.xlu2 %v534_v7 }
 0x3e0   : > { %v348_v35 = vpop.f32.mrf.mxu3 }
 0x3e1   : > { %v739_v8 = vpack.i.bf16 %v348_v35, %v346_v6 }
 0x3e3   : > { %740 = vrot.lane.b32.xlu1 %v739_v8, %s815_s16 }
 0x3e8   : > { %v351_v9 = vpop.f32.mrf.mxu3 }
 0x3e9   : > { %584 = vrot.lane.b32.xlu0 %v351_v9, %s815_s16 }
 0x3f0   : > { %v353_v10 = vpop.f32.mrf.mxu3 }
 0x40b   : > { %v422_v12 = vpop.xlane.xlu2 %421 }
 0x40c   : > { %796 = vrcp.f32 %v422_v12 }
 0x412   : > { %v797_v30 = vpop.eup %796 }
 0x413   : > { %v430_v15 = vmul.f32 %v797_v30, %v785_v54  ;;  %v435_v16 = vpop.permute.xlu2 %434  ;;  %v425_v17 = vpop.xlane.xlu1 %424 }
 0x414   : > { %455 = vmatpush.bf16.msrb.mxu3 %v435_v16  ;;  %798 = vrcp.f32 %v425_v17 }
 0x415   : > { %v432_v18 = vpack.c.bf16 %v430_v15, %v429_v13 }
 0x417   : > { %711 = vmatmul.msk.bf16.vlgmr.msrb.gmra.mxu3 %vm174_vm2, %v432_v18 }
 0x41a   : > { %v799_v19 = vpop.eup %798 }
 0x41b   : > { %v431_v14 = vmul.f32 %v799_v19, %v787_v57 }
 0x41d   : > { %v433_v20 = vpack.c.bf16 %v431_v14, %v431_v14 }
 0x427   : > { %712 = vmatmul.msk.bf16.gmra.mxu3 %vm174_vm2, %v433_v20 }
 0x43e   : > { %v568_v26 = vpop.f32.mrf.mxu2 }
 0x446   : > { %v570_v33 = vpop.f32.mrf.mxu2 }
 0x447   : > { %v749_v36 = vpack.i.bf16 %v570_v33, %v568_v26 }
 0x44c   : > { %v536_v21 = vpop.xlane.xlu2 %535 }
 0x44d   : > { %800 = vrcp.f32 %v536_v21 }
 0x453   : > { %v801_v22 = vpop.eup %800 }
 0x454   : > { %v542_v23 = vmul.f32 %v801_v22, %v793_v5 }
 0x455   : > { %v741_v42 = vpop.permute.xlu1 %740 }
 0x456   : > { %v544_v24 = vpack.c.bf16 %v542_v23, %v542_v23  ;;  %v743_v43 = vunpack.i.h.bf16 %v741_v42  ;;  %v742_v44 = vunpack.i.l.bf16 %v741_v42 }
 0x458   : > { %716 = vmatmul.msk.bf16.gmra.mxu2 %vm174_vm2, %v544_v24  ;;  %v614_v49 = vsel %vm137_vm0, %v925_v28, %v743_v43  ;;  %v613_v48 = vsel %vm137_vm0, %v923_v27, %v742_v44 }
 0x45b   : > { %v585_v40 = vpop.permute.xlu0 %584 }
 0x45c   : > { %v615_v58 = vsel %vm137_vm0, %v927_v32, %v585_v40 }
 0x49a   : > { %v457_v25 = vpop.f32.mrf.mxu3 }
 0x4a2   : > { %v459_v29 = vpop.f32.mrf.mxu3 }
 0x4a3   : > { %v744_v31 = vpack.i.bf16 %v459_v29, %v457_v25 }
 0x4a5   : > { %745 = vrot.lane.b32.xlu0 %v744_v31, %s814_s15 }
 0x4aa   : > { %v462_v34 = vpop.f32.mrf.mxu3 }
 0x4ab   : > { %596 = vrot.lane.b32.xlu1 %v462_v34, %s814_s15 }
 0x4ad   : > { %750 = vrot.lane.b32.xlu0 %v749_v36, %s811_s13 }
 0x4b2   : > { %v464_v37 = vpop.f32.mrf.mxu3 }
 0x4db   : > { %v573_v38 = vpop.f32.mrf.mxu2 }
 0x4dc   : > { %608 = vrot.lane.b32.xlu1 %v573_v38, %s811_s13 }
 0x4e3   : > { %v575_v39 = vpop.f32.mrf.mxu2 }
 0x517   : > { %v746_v41 = vpop.permute.xlu0 %745 }
 0x518   : > { %v748_v45 = vunpack.i.h.bf16 %v746_v41  ;;  %v747_v46 = vunpack.i.l.bf16 %v746_v41 }
 0x51a   : > { %v617_v53 = vsel %vm616_vm4, %v613_v48, %v747_v46  ;;  %v618_v54 = vsel %vm616_vm4, %v614_v49, %v748_v45 }
 0x51d   : > { %v597_v27 = vpop.permute.xlu1 %596 }
 0x51e   : > { %v619_v59 = vsel %vm616_vm4, %v615_v58, %v597_v27 }
 0x51f   : > { %v751_v47 = vpop.permute.xlu0 %750 }
 0x520   : > { %v753_v51 = vunpack.i.h.bf16 %v751_v47  ;;  %v752_v52 = vunpack.i.l.bf16 %v751_v47 }
 0x522   : > { %v621_v55 = vsel %vm620_vm5, %v617_v53, %v752_v52  ;;  %v622_v56 = vsel %vm620_vm5, %v618_v54, %v753_v51 }
 0x523   : > { %v624_v57 = vpack.c.bf16 %v621_v55, %v621_v55  ;;  %v625_v28 = vpack.c.bf16 %v622_v56, %v622_v56 }
 0x525   : > { %628 = vst.msk [vmem:[%s116_s22] sm:$0xf] %vm627_vm6, %v624_v57 }
 0x526   : > { %629 = vst.msk [vmem:[%s116_s22 + $0x4] sm:$0xf] %vm627_vm6, %v625_v28 }
 0x54e   : > { %v609_v60 = vpop.permute.xlu1 %608 }
 0x54f   : > { %v623_v61 = vsel %vm620_vm5, %v619_v59, %v609_v60 }
 0x550   : > { %v626_v62 = vpack.c.bf16 %v623_v61, %v623_v61 }
 0x552   : > { %630 = vst.msk [vmem:[%s116_s22 + $0x8] sm:$0xf] %vm627_vm6, %v626_v62 }
 0x553 PF: > { %s11_s6 = sadd.s32 1, %s808_s6  }
 0x554   : > { %p8_p4 = scmp.ge.s32.totalorder %s11_s6, 4  }
 0x556   :  { %10 = sbr.rel (!%p8_p4) target bundleno = 1 (0x1), region = 54 }

// kernel: dmn_get_image_features.17
= control target key start
LH: loop header
LB: loop body
LE: loop exit
PB: predicated region body
PF: predicated region fallthrough
CT: control target
= control target key end

     0   :  { %s659_s15 = smov 0   ;;  %s661_s16 = smov 0   ;;  %s715_s0 = inlined_call_operand.vmem [shape: bf16[48,64], index: 0, kind: input, shape index: {}]   ;;  %s716_s1 = inlined_call_operand.vmem [shape: bf16[64,64], index: 1, kind: input, shape index: {}]   ;;  %s717_s2 = inlined_call_operand.vmem [shape: f32[1,64], index: 2, kind: input, shape index: {}]   ;;  %s718_s3 = inlined_call_operand.vmem [shape: bf16[48,64], index: 3, kind: input, shape index: {}]   ;;  %s719_s4 = inlined_call_operand.vmem [shape: bf16[48,64], index: 4, kind: output, shape index: {}]  }
   0x1   :  { %s663_s17 = smov 0  }
   0x2 LB: > { %s33_s18 = sadd.s32 1, %s627_s16  ;;  %p544_p0 = scmp.ge.s32.totalorder %s631_s17, 1  ;;  %s631_s17 = sphi %s663_s17, %s14_s17   ;;  %s627_s16 = sphi %s661_s16, %s721_s16   ;;  %s623_s15 = sphi %s659_s15, %s720_s15  }
   0x3   : > { %p35_p1 = scmp.ge.s32.totalorder %s33_s18, 3  ;;  %p229_p2 = scmp.lt.s32.totalorder %s631_s17, 4 }
   0x5   : > { %s723_s18 = smov (%p35_p1, %s33_s18), 0  ;;  %p230_p3 = pnand %p544_p0, %p229_p2 }
   0x6   : > { %s545_s21 = sshll.u32 (!%p230_p3), %s623_s15, 1 }
   0x7   : > { %233 = sbr.rel (%p230_p3) target bundleno = 179 (0xb3), region = 36  ;;  %p281_p4 = scmp.lt.s32.totalorder (!%p230_p3), %s545_s21, 5 }
   0xc   : > { %v578_v0 = vld [vmem:[%s716_s1 + $0x18] sm:$0xff]  ;;  %vm324_vm0 = vcmask 523264   ;;  %v633_v1 = vmov 0.0   ;;  %v577_v2 = vld [vmem:[%s716_s1 + $0x10] sm:$0xff]  ;;  %s725_s21 = smov (!%p281_p4, %s545_s21), 5  ;;  %v576_v3 = vld [vmem:[%s716_s1 + $0x8] sm:$0xff] }
   0xd   : > { %325 = vst.msk [vmem:[#allocation2] sm:$0xff] %vm324_vm0, %v633_v1  ;;  %376 = vmatpush.bf16.msra.mxu0 %v578_v0  ;;  %s546_s26 = sshll.u32 %s725_s21, 2  ;;  %v575_v4 = vld [vmem:[%s716_s1] sm:$0xff]  ;;  %vm409_vm1 = vcmask 519168  }
   0xe   : > { %326 = vst.msk [vmem:[#allocation2 + $0x8] sm:$0xff] %vm324_vm0, %v633_v1  ;;  %s287_s5 = scalar_lea.vmem %s715_s0, %s546_s26  ;;  %s308_s8 = scalar_lea.vmem %s718_s3, %s546_s26  ;;  %v608_v11 = vld [vmem:[%s717_s2] ss:$0 sm:$0xff] }
   0xf   : > { %v574_v5 = vld [vmem:[%s287_s5] sm:$0xff]  ;;  %s317_s13 = scalar_lea.vmem %s719_s4, %s546_s26 }
  0x10   : > { %v580_v9 = vld [vmem:[%s308_s8] sm:$0xff]  }
  0x11   : > { %377 = vmatpush.bf16.msra.mxu0 %v577_v2  ;;  %v581_v13 = vunpack.c.l.bf16 %v580_v9  ;;  %v582_v19 = vunpack.c.h.bf16 %v580_v9 }
  0x14   : > { %v327_v6 = vld [vmem:[#allocation2] sm:$0xff] }
  0x15   : > { %378 = vmatpush.bf16.msra.mxu0 %v576_v3  ;;  %v328_v10 = vld [vmem:[#allocation2 + $0x8] sm:$0xff] }
  0x19   : > { %379 = vmatpush.bf16.msra.mxu0 %v575_v4 }
  0x1c   : > { %571 = vmatmul.msk.bf16.vlgmr.msra.gmra.mxu0 %vm324_vm0, %v574_v5 }
  0x99   : > { %v381_v7 = vpop.f32.mrf.mxu0 }
  0x9a   : > { %v386_v8 = vadd.f32 %v381_v7, %v327_v6 }
  0x9c   : > { %388 = vst.msk [vmem:[#allocation2] sm:$0xff] %vm324_vm0, %v386_v8 }
  0xa1   : > { %v383_v12 = vpop.f32.mrf.mxu0 }
  0xa2   : > { %v387_v14 = vadd.f32 %v383_v12, %v328_v10 }
  0xa3   : > { %v393_v15 = vld [vmem:[#allocation2] sm:$0xff] }
  0xa4   : > { %v399_v16 = vadd.f32 %v608_v11, %v393_v15  ;;  %389 = vst.msk [vmem:[#allocation2 + $0x8] sm:$0xff] %vm324_vm0, %v387_v14 }
  0xa6   : > { %v405_v17 = vadd.f32 %v581_v13, %v399_v16 }
  0xa8   : > { %v407_v18 = vpack.c.bf16 %v405_v17, %v405_v17 }
  0xaa   : > { %410 = vst.msk [vmem:[%s317_s13] sm:$0xf] %vm409_vm1, %v407_v18 }
  0xab   : > { %v394_v20 = vld [vmem:[#allocation2 + $0x8] sm:$0xff] }
  0xac   : > { %v400_v21 = vadd.f32 %v608_v11, %v394_v20 }
  0xae   : > { %v406_v22 = vadd.f32 %v582_v19, %v400_v21 }
  0xb0   : > { %v408_v23 = vpack.c.bf16 %v406_v22, %v406_v22 }
  0xb2   : > { %411 = vst.msk [vmem:[%s317_s13 + $0x4] sm:$0xf] %vm409_vm1, %v408_v23 }
  0xb3 PF: > { %s14_s17 = sadd.s32 1, %s631_s17   ;;  %s720_s15 = smov %s627_s16 }
  0xb4   : > { %p11_p5 = scmp.ge.s32.totalorder %s14_s17, 5   ;;  %s721_s16 = smov %s723_s18 }
  0xb6   :  { %13 = sbr.rel (!%p11_p5) target bundleno = 2 (0x2), region = 83 }

// kernel: dmn_get_image_features.19
= control target key start
LH: loop header
LB: loop body
LE: loop exit
PB: predicated region body
PF: predicated region fallthrough
CT: control target
= control target key end

     0   :  { %s847_s15 = smov 0   ;;  %s849_s16 = smov 0   ;;  %s945_s0 = inlined_call_operand.vmem [shape: bf16[48,256], index: 0, kind: input, shape index: {}]   ;;  %s946_s1 = inlined_call_operand.vmem [shape: bf16[256,64], index: 1, kind: input, shape index: {}]   ;;  %s947_s2 = inlined_call_operand.vmem [shape: f32[1,64], index: 2, kind: input, shape index: {}]   ;;  %s948_s3 = inlined_call_operand.vmem [shape: bf16[48,64], index: 3, kind: input, shape index: {}]   ;;  %s949_s4 = inlined_call_operand.vmem [shape: bf16[48,64], index: 4, kind: output, shape index: {}]  }
   0x1   :  { %s851_s17 = smov 0  }
   0x2 LB: > { %s33_s18 = sadd.s32 1, %s815_s16  ;;  %p666_p0 = scmp.ge.s32.totalorder %s819_s17, 1  ;;  %s819_s17 = sphi %s851_s17, %s14_s17   ;;  %s815_s16 = sphi %s849_s16, %s951_s16   ;;  %s811_s15 = sphi %s847_s15, %s950_s15  }
   0x3   : > { %p35_p1 = scmp.ge.s32.totalorder %s33_s18, 3  ;;  %p232_p2 = scmp.lt.s32.totalorder %s819_s17, 4 }
   0x5   : > { %s953_s18 = smov (%p35_p1, %s33_s18), 0  ;;  %p233_p3 = pnand %p666_p0, %p232_p2 }
   0x6   : > { %s667_s5 = sshll.u32 (!%p233_p3), %s811_s15, 1 }
   0x7   : > { %236 = sbr.rel (%p233_p3) target bundleno = 198 (0xc6), region = 36  ;;  %p287_p4 = scmp.lt.s32.totalorder (!%p233_p3), %s667_s5, 5 }
   0xc   : > { %v758_v0 = vld [vmem:[%s946_s1 + $0x38] sm:$0xff]  ;;  %v757_v2 = vld [vmem:[%s946_s1 + $0x30] sm:$0xff]  ;;  %v756_v4 = vld [vmem:[%s946_s1 + $0x28] sm:$0xff]  ;;  %s955_s5 = smov (!%p287_p4, %s667_s5), 5  ;;  %vm331_vm0 = vcmask 523264   ;;  %v821_v22 = vmov 0.0  }
   0xd   : > { %v766_v1 = vld [vmem:[%s946_s1 + $0x78] sm:$0xff]  ;;  %476 = vmatpush.bf16.msra.mxu0 %v758_v0  ;;  %v765_v3 = vld [vmem:[%s946_s1 + $0x70] sm:$0xff]  ;;  %v764_v5 = vld [vmem:[%s946_s1 + $0x68] sm:$0xff]  ;;  %s748_s21 = sshll.u32 %s955_s5, 3  ;;  %332 = vst.msk [vmem:[#allocation2] sm:$0xff] %vm331_vm0, %v821_v22  ;;  %s671_s8 = sshll.u32 %s955_s5, 2 }
   0xe   : > { %490 = vmatpush.bf16.msra.mxu1 %v766_v1  ;;  %v755_v6 = vld [vmem:[%s946_s1 + $0x20] sm:$0xff]  ;;  %v754_v8 = vld [vmem:[%s946_s1 + $0x18] sm:$0xff]  ;;  %v753_v10 = vld [vmem:[%s946_s1 + $0x10] sm:$0xff]  ;;  %s294_s28 = scalar_lea.vmem %s945_s0, %s748_s21  ;;  %333 = vst.msk [vmem:[#allocation2 + $0x8] sm:$0xff] %vm331_vm0, %v821_v22  ;;  %s316_s11 = scalar_lea.vmem %s948_s3, %s671_s8  ;;  %vm528_vm1 = vcmask 519168  }
   0xf   : > { %v763_v7 = vld [vmem:[%s946_s1 + $0x60] sm:$0xff]  ;;  %v762_v9 = vld [vmem:[%s946_s1 + $0x58] sm:$0xff]  ;;  %v761_v11 = vld [vmem:[%s946_s1 + $0x50] sm:$0xff]  ;;  %s325_s15 = scalar_lea.vmem %s949_s4, %s671_s8 }
  0x10   : > { %v752_v12 = vld [vmem:[%s946_s1 + $0x8] sm:$0xff]  ;;  %v751_v14 = vld [vmem:[%s946_s1] sm:$0xff] }
  0x11   : > { %477 = vmatpush.bf16.msra.mxu0 %v757_v2  ;;  %v760_v13 = vld [vmem:[%s946_s1 + $0x48] sm:$0xff]  ;;  %v759_v15 = vld [vmem:[%s946_s1 + $0x40] sm:$0xff] }
  0x12   : > { %491 = vmatpush.bf16.msra.mxu1 %v765_v3  ;;  %v676_v16 = vld [vmem:[%s294_s28] sm:$0xf]  ;;  %v750_v17 = vld [vmem:[%s294_s28 + $0x4] sm:$0xf0]  ;;  %v749_v18 = vld [vmem:[%s294_s28 + $0x4] sm:$0xf] }
  0x13   : > { %v678_v19 = vld [vmem:[%s294_s28 + $0x8] sm:$0xf0]  ;;  %v677_v20 = vor.u32 %v750_v17, %v676_v16  ;;  %v768_v28 = vld [vmem:[%s316_s11] sm:$0xff]  }
  0x14   : > { %v681_v21 = vor.u32 %v749_v18, %v678_v19  ;;  %v334_v24 = vld [vmem:[#allocation2] sm:$0xff]  ;;  %v769_v34 = vunpack.c.l.bf16 %v768_v28  ;;  %v770_v40 = vunpack.c.h.bf16 %v768_v28 }
  0x15   : > { %478 = vmatpush.bf16.msra.mxu0 %v756_v4  ;;  %v335_v30 = vld [vmem:[#allocation2 + $0x8] sm:$0xff]  ;;  %v796_v32 = vld [vmem:[%s947_s2] ss:$0 sm:$0xff] }
  0x16   : > { %492 = vmatpush.bf16.msra.mxu1 %v764_v5 }
  0x19   : > { %479 = vmatpush.bf16.msra.mxu0 %v755_v6 }
  0x1a   : > { %493 = vmatpush.bf16.msra.mxu1 %v763_v7 }
  0x1d   : > { %480 = vmatpush.bf16.msra.mxu0 %v754_v8 }
  0x1e   : > { %494 = vmatpush.bf16.msra.mxu1 %v762_v9 }
  0x21   : > { %481 = vmatpush.bf16.msra.mxu0 %v753_v10 }
  0x22   : > { %495 = vmatpush.bf16.msra.mxu1 %v761_v11 }
  0x25   : > { %482 = vmatpush.bf16.msra.mxu0 %v752_v12 }
  0x26   : > { %496 = vmatpush.bf16.msra.mxu1 %v760_v13 }
  0x29   : > { %483 = vmatpush.bf16.msra.mxu0 %v751_v14 }
  0x2a   : > { %497 = vmatpush.bf16.msra.mxu1 %v759_v15 }
  0x2c   : > { %484 = vmatmul.bf16.vlgmr.msra.gmra.mxu0 %v677_v20 }
  0x2d   : > { %498 = vmatmul.bf16.vlgmr.msra.gmra.mxu1 %v681_v21 }
  0xa9   : > { %v485_v23 = vpop.f32.mrf.mxu0 }
  0xaa   : > { %v499_v25 = vpop.f32.mrf.mxu1 }
  0xab   : > { %v500_v26 = vadd.f32 %v499_v25, %v485_v23 }
  0xad   : > { %v504_v27 = vadd.f32 %v500_v26, %v334_v24 }
  0xaf   : > { %507 = vst.msk [vmem:[#allocation2] sm:$0xff] %vm331_vm0, %v504_v27 }
  0xb1   : > { %v487_v29 = vpop.f32.mrf.mxu0 }
  0xb2   : > { %v501_v31 = vpop.f32.mrf.mxu1 }
  0xb3   : > { %v502_v33 = vadd.f32 %v501_v31, %v487_v29 }
  0xb5   : > { %v505_v35 = vadd.f32 %v502_v33, %v335_v30 }
  0xb6   : > { %v512_v36 = vld [vmem:[#allocation2] sm:$0xff] }
  0xb7   : > { %v518_v37 = vadd.f32 %v796_v32, %v512_v36  ;;  %508 = vst.msk [vmem:[#allocation2 + $0x8] sm:$0xff] %vm331_vm0, %v505_v35 }
  0xb9   : > { %v524_v38 = vadd.f32 %v769_v34, %v518_v37 }
  0xbb   : > { %v526_v39 = vpack.c.bf16 %v524_v38, %v524_v38 }
  0xbd   : > { %529 = vst.msk [vmem:[%s325_s15] sm:$0xf] %vm528_vm1, %v526_v39 }
  0xbe   : > { %v513_v41 = vld [vmem:[#allocation2 + $0x8] sm:$0xff] }
  0xbf   : > { %v519_v42 = vadd.f32 %v796_v32, %v513_v41 }
  0xc1   : > { %v525_v43 = vadd.f32 %v770_v40, %v519_v42 }
  0xc3   : > { %v527_v44 = vpack.c.bf16 %v525_v43, %v525_v43 }
  0xc5   : > { %530 = vst.msk [vmem:[%s325_s15 + $0x4] sm:$0xf] %vm528_vm1, %v527_v44 }
  0xc6 PF: > { %s14_s17 = sadd.s32 1, %s819_s17   ;;  %s950_s15 = smov %s815_s16 }
  0xc7   : > { %p11_p5 = scmp.ge.s32.totalorder %s14_s17, 5   ;;  %s951_s16 = smov %s953_s18 }
  0xc9   :  { %13 = sbr.rel (!%p11_p5) target bundleno = 2 (0x2), region = 83 }

// kernel: dmn_get_image_features.18
= control target key start
LH: loop header
LB: loop body
LE: loop exit
PB: predicated region body
PF: predicated region fallthrough
CT: control target
= control target key end

     0   :  { %s817_s18 = smov 0   ;;  %s819_s19 = smov 0   ;;  %s939_s0 = inlined_call_operand.vmem [shape: bf16[48,64], index: 0, kind: input, shape index: {}]   ;;  %s940_s1 = inlined_call_operand.vmem [shape: f32[1,64], index: 1, kind: input, shape index: {}]   ;;  %s941_s2 = inlined_call_operand.vmem [shape: f32[1,64], index: 2, kind: input, shape index: {}]   ;;  %s942_s3 = inlined_call_operand.vmem [shape: bf16[64,256], index: 3, kind: input, shape index: {}]   ;;  %s943_s4 = inlined_call_operand.vmem [shape: f32[1,256], index: 4, kind: input, shape index: {}]   ;;  %s944_s5 = inlined_call_operand.vmem [shape: bf16[48,256], index: 5, kind: output, shape index: {}]  }
   0x1   :  { %s821_s20 = smov 0  }
   0x2 LB: > { %s27_s21 = sadd.s32 1, %s780_s19  ;;  %p654_p0 = scmp.ge.s32.totalorder %s784_s20, 1  ;;  %s784_s20 = sphi %s821_s20, %s15_s20   ;;  %s780_s19 = sphi %s819_s19, %s946_s19   ;;  %s776_s18 = sphi %s817_s18, %s945_s18  }
   0x3   : > { %p29_p1 = scmp.ge.s32.totalorder %s27_s21, 3  ;;  %p223_p2 = scmp.lt.s32.totalorder %s784_s20, 4 }
   0x5   : > { %s948_s21 = smov (%p29_p1, %s27_s21), 0  ;;  %p224_p3 = pnand %p654_p0, %p223_p2 }
   0x6   : > { %s655_s22 = sshll.u32 (!%p224_p3), %s776_s18, 1 }
   0x7   : > { %227 = sbr.rel (%p224_p3) target bundleno = 470 (0x1d6), region = 40  ;;  %p266_p4 = scmp.lt.s32.totalorder (!%p224_p3), %s655_s22, 5 }
   0xc   : > { %s950_s22 = smov (!%p266_p4, %s655_s22), 5  ;;  %vm299_vm0 = vcmask 523264   ;;  %v786_v5 = vmov 64.0   ;;  %v686_v22 = vld [vmem:[%s942_s3 + $0x30] sm:$0xf] }
   0xd   : > { %s656_s23 = sshll.u32 %s950_s22, 2  ;;  %740 = vrcp.f32 %v786_v5  ;;  %v708_v23 = vld [vmem:[%s942_s3 + $0x34] sm:$0xf0]  ;;  %v707_v24 = vld [vmem:[%s942_s3 + $0x34] sm:$0xf] }
   0xe   : > { %s269_s26 = scalar_lea.vmem %s939_s0, %s656_s23  ;;  %v687_v25 = vor.u32 %v708_v23, %v686_v22  ;;  %v688_v26 = vld [vmem:[%s942_s3 + $0x38] sm:$0xf0]  ;;  %v678_v28 = vld [vmem:[%s942_s3 + $0x20] sm:$0xf]  ;;  %v706_v29 = vld [vmem:[%s942_s3 + $0x24] sm:$0xf0] }
   0xf   : > { %v710_v0 = vld [vmem:[%s269_s26] sm:$0xff]   ;;  %v691_v27 = vor.u32 %v707_v24, %v688_v26  ;;  %v679_v31 = vor.u32 %v706_v29, %v678_v28  ;;  %v680_v32 = vld [vmem:[%s942_s3 + $0x28] sm:$0xf0]  ;;  %v670_v34 = vld [vmem:[%s942_s3 + $0x10] sm:$0xf]  ;;  %s700_s23 = sshll.u32 %s950_s22, 3 }
  0x10   : > { %v711_v1 = vunpack.c.l.bf16 %v710_v0  ;;  %v712_v3 = vunpack.c.h.bf16 %v710_v0  ;;  %425 = vmatpush.bf16.msra.mxu0 %v687_v25  ;;  %v705_v30 = vld [vmem:[%s942_s3 + $0x24] sm:$0xf]  ;;  %v704_v35 = vld [vmem:[%s942_s3 + $0x14] sm:$0xf0]  ;;  %v703_v36 = vld [vmem:[%s942_s3 + $0x14] sm:$0xf]  ;;  %s291_s26 = scalar_lea.vmem %s944_s5, %s700_s23 }
  0x11   : > { %439 = vmatpush.bf16.msra.mxu1 %v691_v27  ;;  %v683_v33 = vor.u32 %v705_v30, %v680_v32  ;;  %v671_v37 = vor.u32 %v704_v35, %v670_v34  ;;  %v672_v38 = vld [vmem:[%s942_s3 + $0x18] sm:$0xf0]  ;;  %v662_v40 = vld [vmem:[%s942_s3] sm:$0xf]  ;;  %v702_v41 = vld [vmem:[%s942_s3 + $0x4] sm:$0xf0] }
  0x12   : > { %v300_v2 = vsel %vm299_vm0, %v711_v1, 0.0  ;;  %v303_v4 = vsel %vm299_vm0, %v712_v3, 0.0  ;;  %v675_v39 = vor.u32 %v703_v36, %v672_v38  ;;  %v701_v42 = vld [vmem:[%s942_s3 + $0x4] sm:$0xf]  ;;  %v663_v44 = vor.u32 %v702_v41, %v662_v40  ;;  %v664_v45 = vld [vmem:[%s942_s3 + $0x8] sm:$0xf0] }
  0x13   : > { %301 = vadd.xlane.f32.xlu0 %v300_v2  ;;  %v741_v6 = vpop.eup %740  ;;  %v667_v47 = vor.u32 %v701_v42, %v664_v45 }
  0x14   : > { %v307_v7 = vmul.f32 64.0, %v741_v6  ;;  %vm311_vm1 = vweird.f32 %v741_v6  ;;  %426 = vmatpush.bf16.msra.mxu0 %v679_v31 }
  0x15   : > { %440 = vmatpush.bf16.msra.mxu1 %v683_v33 }
  0x16   : > { %v308_v8 = vsub.f32 1.0, %v307_v7 }
  0x18   : > { %v309_v9 = vmul.f32 %v741_v6, %v308_v8  ;;  %427 = vmatpush.bf16.msra.mxu0 %v671_v37 }
  0x19   : > { %441 = vmatpush.bf16.msra.mxu1 %v675_v39 }
  0x1a   : > { %v310_v10 = vadd.f32 %v741_v6, %v309_v9 }
  0x1b   : > { %304 = vadd.xlane.f32.xlu0 %v303_v4 }
  0x1c   : > { %v312_v11 = vsel %vm311_vm1, %v741_v6, %v310_v10  ;;  %428 = vmatpush.bf16.msra.mxu0 %v663_v44  ;;  %v739_v6 = vld [vmem:[%s941_s2] ss:$0 sm:$0xff] }
  0x1d   : > { %442 = vmatpush.bf16.msra.mxu1 %v667_v47 }
  0x86   : > { %v302_v12 = vpop.xlane.xlu0 %301 }
  0x87   : > { %v313_v13 = vmul.f32 %v312_v11, %v302_v12 }
  0x89   : > { %v843_v14 = vsub.f32 %v711_v1, %v313_v13  ;;  %v738_v1 = vld [vmem:[%s940_s1] ss:$0 sm:$0xff] }
  0x8b   : > { %v317_v15 = vmul.f32 %v843_v14, %v843_v14 }
  0x8d   : > { %v319_v16 = vsel %vm299_vm0, %v317_v15, 0.0 }
  0x8e   : > { %320 = vadd.xlane.f32.xlu1 %v319_v16  ;;  %v305_v17 = vpop.xlane.xlu0 %304 }
  0x8f   : > { %v314_v18 = vmul.f32 %v312_v11, %v305_v17 }
  0x91   : > { %v848_v19 = vsub.f32 %v712_v3, %v314_v18 }
  0x93   : > { %v318_v20 = vmul.f32 %v848_v19, %v848_v19 }
  0x95   : > { %v322_v21 = vsel %vm299_vm0, %v318_v20, 0.0 }
  0x96   : > { %323 = vadd.xlane.f32.xlu1 %v322_v21 }
 0x101   : > { %v321_v43 = vpop.xlane.xlu1 %320 }
 0x102   : > { %v325_v46 = vmul.f32 %v321_v43, %v312_v11 }
 0x104   : > { %v327_v48 = vadd.f32 1e-05, %v325_v46 }
 0x106   : > { %742 = vrsqrt.f32 %v327_v48  ;;  %vm335_vm3 = vweird.f32 %v327_v48 }
 0x109   : > { %v324_v49 = vpop.xlane.xlu1 %323 }
 0x10a   : > { %v326_v50 = vmul.f32 %v324_v49, %v312_v11  ;;  %v372_v11 = vld [vmem:[%s943_s4] sm:$0x3] }
 0x10b   : > { %v374_v12 = vperm.slane %v372_v11, 0  ;;  %v375_v13 = vperm.slane %v372_v11, 1 }
 0x10c   : > { %v743_v51 = vpop.eup %742  ;;  %v328_v52 = vadd.f32 1e-05, %v326_v50 }
 0x10d   : > { %v330_v53 = vmul.f32 %v743_v51, %v327_v48  ;;  %vm336_vm2 = vweird.f32 %v743_v51 }
 0x10e   : > { %744 = vrsqrt.f32 %v328_v52  ;;  %vm337_vm4 = vmor %vm335_vm3, %vm336_vm2  ;;  %vm345_vm6 = vweird.f32 %v328_v52 }
 0x10f   : > { %v331_v54 = vmul.f32 %v743_v51, %v330_v53 }
 0x111   : > { %v332_v55 = vmul.f32 0.5, %v331_v54 }
 0x113   : > { %v333_v56 = vsub.f32 1.5, %v332_v55 }
 0x114   : > { %v745_v57 = vpop.eup %744 }
 0x115   : > { %v334_v58 = vmul.f32 %v743_v51, %v333_v56  ;;  %v340_v59 = vmul.f32 %v745_v57, %v328_v52  ;;  %vm346_vm5 = vweird.f32 %v745_v57 }
 0x116   : > { %vm347_vm7 = vmor %vm345_vm6, %vm346_vm5 }
 0x117   : > { %v341_v60 = vmul.f32 %v745_v57, %v340_v59  ;;  %v338_v61 = vsel %vm337_vm4, %v743_v51, %v334_v58 }
 0x118   : > { %v349_v0 = vmul.f32 %v338_v61, %v843_v14 }
 0x119   : > { %v342_v62 = vmul.f32 0.5, %v341_v60 }
 0x11a   : > { %v355_v5 = vmul.f32 %v738_v1, %v349_v0 }
 0x11b   : > { %v343_v63 = vsub.f32 1.5, %v342_v62 }
 0x11c   : > { %v361_v8 = vadd.f32 %v739_v6, %v355_v5 }
 0x11d   : > { %v344_v2 = vmul.f32 %v745_v57, %v343_v63 }
 0x11f   : > { %v348_v3 = vsel %vm347_vm7, %v745_v57, %v344_v2 }
 0x120   : > { %v350_v4 = vmul.f32 %v348_v3, %v848_v19 }
 0x122   : > { %v356_v7 = vmul.f32 %v738_v1, %v350_v4 }
 0x124   : > { %v362_v9 = vadd.f32 %v739_v6, %v356_v7 }
 0x126   : > { %v363_v10 = vpack.c.bf16 %v362_v9, %v361_v8 }
 0x128   : > { %692 = vmatmul.msk.bf16.vlgmr.msra.gmra.mxu0 %vm299_vm0, %v363_v10  ;;  %693 = vmatmul.msk.bf16.vlgmr.msra.gmra.mxu1 %vm299_vm0, %v363_v10 }
 0x1a5   : > { %v430_v14 = vpop.f32.mrf.mxu0  ;;  %v444_v15 = vpop.f32.mrf.mxu1 }
 0x1a6   : > { %v431_v16 = vadd.f32 %v430_v14, %v374_v12  ;;  %v914_v17 = vadd.f32 %v444_v15, %v375_v13 }
 0x1a8   : > { %v694_v18 = vmul.f32 -1.702, %v431_v16  ;;  %v695_v19 = vmul.f32 -1.702, %v914_v17 }
 0x1aa   : > { %v457_v20 = vmul.f32 1.442695, %v694_v18  ;;  %v459_v21 = vmul.f32 1.442695, %v695_v19 }
 0x1ac   : > { %746 = vpow2.f32 %v457_v20 }
 0x1ad   : > { %748 = vpow2.f32 %v459_v21  ;;  %v432_v22 = vpop.f32.mrf.mxu0  ;;  %v446_v23 = vpop.f32.mrf.mxu1 }
 0x1ae   : > { %v917_v24 = vadd.f32 %v432_v22, %v374_v12  ;;  %v919_v25 = vadd.f32 %v446_v23, %v375_v13 }
 0x1b0   : > { %v696_v26 = vmul.f32 -1.702, %v917_v24  ;;  %v697_v27 = vmul.f32 -1.702, %v919_v25 }
 0x1b2   : > { %v747_v28 = vpop.eup %746  ;;  %v461_v29 = vmul.f32 1.442695, %v696_v26  ;;  %v463_v32 = vmul.f32 1.442695, %v697_v27 }
 0x1b3   : > { %v749_v30 = vpop.eup %748  ;;  %v465_v31 = vadd.f32 1.0, %v747_v28 }
 0x1b4   : > { %v466_v33 = vadd.f32 1.0, %v749_v30  ;;  %750 = vpow2.f32 %v461_v29 }
 0x1b5   : > { %752 = vrcp.f32 %v465_v31  ;;  %v478_v43 = vand.u32 2147483647, %v465_v31  ;;  %v480_v44 = vand.u32 2147483648, %v465_v31  ;;  %vm474_vm10 = vweird.f32 %v465_v31 }
 0x1b6   : > { %754 = vrcp.f32 %v466_v33  ;;  %v495_v47 = vand.u32 2147483648, %v466_v33  ;;  %v493_v49 = vand.u32 2147483647, %v466_v33  ;;  %vm489_vm12 = vweird.f32 %v466_v33 }
 0x1b7   : > { %756 = vpow2.f32 %v463_v32  ;;  %v481_v52 = vor.u32 1.1754944e-38, %v480_v44  ;;  %vm479_vm13 = vcmp.eq.f32.partialorder %v478_v43, 8.507059e+37 }
 0x1b8   : > { %v496_v55 = vor.u32 1.1754944e-38, %v495_v47  ;;  %vm494_vm15 = vcmp.eq.f32.partialorder %v493_v49, 8.507059e+37 }
 0x1ba   : > { %v751_v34 = vpop.eup %750 }
 0x1bb   : > { %v753_v35 = vpop.eup %752  ;;  %v467_v36 = vadd.f32 1.0, %v751_v34 }
 0x1bc   : > { %v755_v37 = vpop.eup %754  ;;  %v470_v38 = vmul.f32 %v753_v35, %v465_v31  ;;  %vm475_vm8 = vweird.f32 %v753_v35 }
 0x1bd   : > { %v757_v39 = vpop.eup %756  ;;  %v485_v40 = vmul.f32 %v755_v37, %v466_v33  ;;  %758 = vrcp.f32 %v467_v36  ;;  %vm490_vm9 = vweird.f32 %v755_v37  ;;  %vm476_vm11 = vmor %vm474_vm10, %vm475_vm8  ;;  %v510_v0 = vand.u32 2147483648, %v467_v36 }
 0x1be   : > { %v471_v41 = vsub.f32 1.0, %v470_v38  ;;  %v468_v42 = vadd.f32 1.0, %v757_v39  ;;  %vm491_vm14 = vmor %vm489_vm12, %vm490_vm9  ;;  %v508_v3 = vand.u32 2147483647, %v467_v36  ;;  %vm504_vm1 = vweird.f32 %v467_v36 }
 0x1bf   : > { %v486_v45 = vsub.f32 1.0, %v485_v40  ;;  %v511_v8 = vor.u32 1.1754944e-38, %v510_v0 }
 0x1c0   : > { %v472_v46 = vmul.f32 %v753_v35, %v471_v41  ;;  %760 = vrcp.f32 %v468_v42  ;;  %v525_v7 = vand.u32 2147483648, %v468_v42  ;;  %v523_v10 = vand.u32 2147483647, %v468_v42 }
 0x1c1   : > { %v487_v48 = vmul.f32 %v755_v37, %v486_v45  ;;  %vm509_vm4 = vcmp.eq.f32.partialorder %v508_v3, 8.507059e+37  ;;  %vm519_vm5 = vweird.f32 %v468_v42 }
 0x1c2   : > { %v473_v50 = vadd.f32 %v753_v35, %v472_v46  ;;  %v526_v14 = vor.u32 1.1754944e-38, %v525_v7  ;;  %vm524_vm7 = vcmp.eq.f32.partialorder %v523_v10, 8.507059e+37 }
 0x1c3   : > { %v759_v51 = vpop.eup %758  ;;  %v488_v53 = vadd.f32 %v755_v37, %v487_v48 }
 0x1c4   : > { %v477_v54 = vsel %vm476_vm11, %v753_v35, %v473_v50  ;;  %v500_v56 = vmul.f32 %v759_v51, %v467_v36  ;;  %vm505_vm0 = vweird.f32 %v759_v51 }
 0x1c5   : > { %v482_v57 = vsel %vm479_vm13, %v481_v52, %v477_v54  ;;  %v492_v58 = vsel %vm491_vm14, %v755_v37, %v488_v53  ;;  %vm506_vm2 = vmor %vm504_vm1, %vm505_vm0 }
 0x1c6   : > { %v761_v59 = vpop.eup %760  ;;  %v529_v60 = vmul.f32 %v482_v57, %v431_v16  ;;  %v497_v61 = vsel %vm494_vm15, %v496_v55, %v492_v58  ;;  %v501_v62 = vsub.f32 1.0, %v500_v56 }
 0x1c7   : > { %v530_v63 = vmul.f32 %v497_v61, %v914_v17  ;;  %v515_v1 = vmul.f32 %v761_v59, %v468_v42  ;;  %vm520_vm3 = vweird.f32 %v761_v59 }
 0x1c8   : > { %v502_v2 = vmul.f32 %v759_v51, %v501_v62  ;;  %vm521_vm6 = vmor %vm519_vm5, %vm520_vm3 }
 0x1c9   : > { %v533_v4 = vpack.c.bf16 %v530_v63, %v529_v60  ;;  %v516_v5 = vsub.f32 1.0, %v515_v1 }
 0x1ca   : > { %v503_v6 = vadd.f32 %v759_v51, %v502_v2 }
 0x1cb   : > { %535 = vst [vmem:[%s291_s26] sm:$0xff] %v533_v4  ;;  %v517_v9 = vmul.f32 %v761_v59, %v516_v5 }
 0x1cc   : > { %v507_v11 = vsel %vm506_vm2, %v759_v51, %v503_v6 }
 0x1cd   : > { %v512_v12 = vsel %vm509_vm4, %v511_v8, %v507_v11  ;;  %v518_v13 = vadd.f32 %v761_v59, %v517_v9 }
 0x1ce   : > { %v531_v15 = vmul.f32 %v512_v12, %v917_v24 }
 0x1cf   : > { %v522_v16 = vsel %vm521_vm6, %v761_v59, %v518_v13 }
 0x1d0   : > { %v527_v17 = vsel %vm524_vm7, %v526_v14, %v522_v16 }
 0x1d1   : > { %v532_v18 = vmul.f32 %v527_v17, %v919_v25 }
 0x1d3   : > { %v534_v19 = vpack.c.bf16 %v532_v18, %v531_v15 }
 0x1d5   : > { %536 = vst [vmem:[%s291_s26 + $0x8] sm:$0xff] %v534_v19 }
 0x1d6 PF: > { %s15_s20 = sadd.s32 1, %s784_s20   ;;  %s945_s18 = smov %s780_s19 }
 0x1d7   : > { %p12_p5 = scmp.ge.s32.totalorder %s15_s20, 5   ;;  %s946_s19 = smov %s948_s21 }
 0x1d9   :  { %14 = sbr.rel (!%p12_p5) target bundleno = 2 (0x2), region = 76 }

// kernel: dmn_get_image_features.25
= control target key start
LH: loop header
LB: loop body
LE: loop exit
PB: predicated region body
PF: predicated region fallthrough
CT: control target
= control target key end

     0   :  { %vm21_vm0 = vcmask 517120   ;;  %s274_s0 = inlined_call_operand.vmem [shape: bf16[2,64], index: 0, kind: input, shape index: {}]   ;;  %s275_s1 = inlined_call_operand.vmem [shape: f32[1,64], index: 1, kind: input, shape index: {}]   ;;  %s276_s2 = inlined_call_operand.vmem [shape: f32[1,64], index: 2, kind: input, shape index: {}]   ;;  %s277_s3 = inlined_call_operand.vmem [shape: bf16[64,32], index: 3, kind: input, shape index: {}]   ;;  %s278_s4 = inlined_call_operand.hbm [shape: f32[2,32], index: 4, kind: output, shape index: {}]  }
   0x1   :  { %v19_v0 = vld [vmem:[%s274_s0] sm:$0x1] }
   0x2   :  { %v20_v1 = vunpack.c.l.bf16 %v19_v0 }
   0x3   :  { %9 = vsyncpa [#allocation3], 0  ;;  %v219_v3 = vmov 64.0   ;;  %v180_v15 = vld [vmem:[%s277_s3 + $0x18] sm:$0xff]  ;;  %v179_v16 = vld [vmem:[%s277_s3 + $0x10] sm:$0xff]  ;;  %vm94_vm5 = vcmask 523264  }
   0x4   :  { %v22_v2 = vsel %vm21_vm0, %v20_v1, 0.0  ;;  %185 = vrcp.f32 %v219_v3  ;;  %102 = vmatpush.bf16.msra.mxu0 %v180_v15  ;;  %v178_v17 = vld [vmem:[%s277_s3 + $0x8] sm:$0xff]  ;;  %v177_v18 = vld [vmem:[%s277_s3] sm:$0xff]  ;;  %vm112_vm6 = vcmask 254976   ;;  %s151_s29 = sshll.u32 %s278_s4, 4  ;;  %s152_s29 = int_to_ptr.hbm [resolvable:$true] %s151_s29 }
   0x5   :  { %23 = vadd.xlane.f32.xlu0 %v22_v2  ;;  %v183_v28 = vld [vmem:[%s275_s1] ss:$0 sm:$0xff]  ;;  %s220_s1 = smov [#allocation2]  }
   0x6   :  { %v184_v31 = vld [vmem:[%s276_s2] ss:$0 sm:$0xff]  ;;  %s149_s2 = sshll.u32 %s220_s1, 4  ;;  %s150_s2 = int_to_ptr.vmem [resolvable:$true] %s149_s2 }
   0x8   :  { %103 = vmatpush.bf16.msra.mxu0 %v179_v16 }
   0xa   :  { %v186_v4 = vpop.eup %185 }
   0xb   :  { %v26_v5 = vmul.f32 64.0, %v186_v4  ;;  %vm30_vm1 = vweird.f32 %v186_v4 }
   0xc   :  { %104 = vmatpush.bf16.msra.mxu0 %v178_v17 }
   0xd   :  { %v27_v6 = vsub.f32 1.0, %v26_v5 }
   0xf   :  { %v28_v7 = vmul.f32 %v186_v4, %v27_v6 }
  0x10   :  { %105 = vmatpush.bf16.msra.mxu0 %v177_v18 }
  0x11   :  { %v29_v8 = vadd.f32 %v186_v4, %v28_v7 }
  0x13   :  { %v31_v9 = vsel %vm30_vm1, %v186_v4, %v29_v8 }
  0x78   :  { %v24_v10 = vpop.xlane.xlu0 %23 }
  0x79   :  { %v32_v11 = vmul.f32 %v31_v9, %v24_v10 }
  0x7b   :  { %v33_v12 = vsub.f32 %v20_v1, %v32_v11 }
  0x7d   :  { %v34_v13 = vmul.f32 %v33_v12, %v33_v12 }
  0x7f   :  { %v35_v14 = vsel %vm21_vm0, %v34_v13, 0.0 }
  0x80   :  { %36 = vadd.xlane.f32.xlu0 %v35_v14 }
  0xf3   :  { %v37_v19 = vpop.xlane.xlu0 %36 }
  0xf4   :  { %v38_v20 = vmul.f32 %v37_v19, %v31_v9 }
  0xf6   :  { %v39_v21 = vadd.f32 1e-05, %v38_v20 }
  0xf8   :  { %187 = vrsqrt.f32 %v39_v21  ;;  %vm46_vm3 = vweird.f32 %v39_v21 }
  0xfe   :  { %v188_v22 = vpop.eup %187 }
  0xff   :  { %v41_v23 = vmul.f32 %v188_v22, %v39_v21  ;;  %vm47_vm2 = vweird.f32 %v188_v22 }
 0x100   :  { %vm48_vm4 = vmor %vm46_vm3, %vm47_vm2 }
 0x101   :  { %v42_v24 = vmul.f32 %v188_v22, %v41_v23 }
 0x103   :  { %v43_v25 = vmul.f32 0.5, %v42_v24 }
 0x105   :  { %v44_v26 = vsub.f32 1.5, %v43_v25 }
 0x107   :  { %v45_v27 = vmul.f32 %v188_v22, %v44_v26 }
 0x109   :  { %v49_v29 = vsel %vm48_vm4, %v188_v22, %v45_v27 }
 0x10a   :  { %v50_v30 = vmul.f32 %v49_v29, %v33_v12 }
 0x10c   :  { %v55_v32 = vmul.f32 %v183_v28, %v50_v30 }
 0x10e   :  { %v60_v33 = vadd.f32 %v184_v31, %v55_v32 }
 0x110   :  { %v61_v34 = vpack.c.bf16 %v60_v33, %v60_v33 }
 0x112   :  { %176 = vmatmul.msk.bf16.vlgmr.msra.gmra.mxu0 %vm94_vm5, %v61_v34 }
 0x18f   :  { %v107_v35 = vpop.f32.mrf.mxu0 }
 0x190   :  { %v111_v36 = vmul.f32 %v107_v35, %v107_v35 }
 0x192   :  { %v113_v37 = vsel %vm112_vm6, %v111_v36, 0.0 }
 0x193   :  { %114 = vadd.xlane.f32.xlu1 %v113_v37 }
 0x197   :  { %v109_v38 = vpop.f32.mrf.mxu0 }
 0x206   :  { %v115_v39 = vpop.xlane.xlu1 %114 }
 0x207   :  { %189 = vrsqrt.f32 %v115_v39  ;;  %vm123_vm7 = vcmp.eq.f32.partialorder %v115_v39, inf  ;;  %v126_v47 = vand.u32 2147483648, %v115_v39  ;;  %vm125_vm8 = vcmp.eq.f32.partialorder %v115_v39, 0.0 }
 0x20d   :  { %v190_v40 = vpop.eup %189 }
 0x20e   :  { %v117_v41 = vmul.f32 %v190_v40, %v115_v39 }
 0x210   :  { %v118_v42 = vmul.f32 %v190_v40, %v117_v41 }
 0x212   :  { %v119_v43 = vmul.f32 0.5, %v118_v42 }
 0x214   :  { %v120_v44 = vsub.f32 1.5, %v119_v43 }
 0x216   :  { %v121_v45 = vmul.f32 %v190_v40, %v120_v44 }
 0x218   :  { %v122_v46 = vmul.f32 %v121_v45, %v115_v39 }
 0x21a   :  { %v124_v48 = vsel %vm123_vm7, %v115_v39, %v122_v46 }
 0x21b   :  { %v127_v49 = vsel %vm125_vm8, %v126_v47, %v124_v48 }
 0x21c   :  { %191 = vrcp.f32 %v127_v49  ;;  %v139_v53 = vand.u32 2147483648, %v127_v49  ;;  %v137_v55 = vand.u32 2147483647, %v127_v49  ;;  %vm133_vm10 = vweird.f32 %v127_v49 }
 0x21e   :  { %v140_v57 = vor.u32 1.1754944e-38, %v139_v53  ;;  %vm138_vm12 = vcmp.eq.f32.partialorder %v137_v55, 8.507059e+37 }
 0x222   :  { %v192_v50 = vpop.eup %191 }
 0x223   :  { %v129_v51 = vmul.f32 %v192_v50, %v127_v49  ;;  %vm134_vm9 = vweird.f32 %v192_v50 }
 0x224   :  { %vm135_vm11 = vmor %vm133_vm10, %vm134_vm9 }
 0x225   :  { %v130_v52 = vsub.f32 1.0, %v129_v51 }
 0x227   :  { %v131_v54 = vmul.f32 %v192_v50, %v130_v52 }
 0x229   :  { %v132_v56 = vadd.f32 %v192_v50, %v131_v54 }
 0x22b   :  { %v136_v58 = vsel %vm135_vm11, %v192_v50, %v132_v56 }
 0x22c   :  { %v141_v59 = vsel %vm138_vm12, %v140_v57, %v136_v58 }
 0x22d   :  { %v142_v60 = vmul.f32 %v141_v59, %v107_v35 }
 0x22f   :  { %143 = vst.msk [vmem:[#allocation2] sm:$0x3] %vm112_vm6, %v142_v60 }
 0x230   :  { %154 = dma.vmem_to_hbm [thread:$0]  %s150_s2, 32, %s152_s29, [#allocation3]  }
 0x231   :  { %217 = dma.done.wait [#allocation3], 32  }
 0x232   :  { %218 = vsyncadd [#allocation3], 4294967264 }
 0x233   :  { %159 = vsyncpa [#allocation3], 1 }

</bundles_post_ra>
